<compile_context>
chip_gen: v6e
topology: v6e:2x2x1
jax: 0.10.0
libtpu: 0.0.40
codegen_flags: <defaults>
</compile_context>

<pallas_src>
import functools

import jax
import jax.numpy as jnp
from jax import lax
from jax.experimental import pallas as pl
from jax.experimental.pallas import tpu as pltpu


def gat2_kernel(x_ref, adj_ref,
                w1_ref, asrc1_ref, adst1_ref, b1_ref,
                w2_ref, asrc2_ref, adst2_ref, b2_ref,
                out_ref, *, heads, negative_slope):
    """Both GATConv layers fused in one kernel; intermediate h stays on-chip."""
    adj = adj_ref[...]
    # Additive softmax mask, computed once and shared by both layers / all heads.
    neg_mask = jnp.where(adj > 0, 0.0, -1e30)                       # [N, N]

    def gat_layer(x, w_all, asrc_bd, adst_bd, bias, apply_elu):
        n = x.shape[0]
        hf = w_all.shape[1]
        f_out = hf // heads

        # One lane-dense projection for all heads: [N, H*F_out]
        xw_all = jnp.dot(x, w_all, preferred_element_type=jnp.float32)
        # All heads' attention logits in two dots (instead of 12 tiny ones).
        a_dst_all = jnp.dot(xw_all, adst_bd,
                            preferred_element_type=jnp.float32)      # [N, H]
        a_src_all = lax.dot_general(asrc_bd, xw_all,
                                    dimension_numbers=(((1,), (1,)), ((), ())),
                                    preferred_element_type=jnp.float32)  # [H, N]

        acc = jnp.zeros((n, f_out), jnp.float32)
        for h in range(heads):                                        # static head loop
            # e[i, j] = LeakyReLU(a_dst[i] + a_src[j]), masked to edges j -> i
            e = a_dst_all[:, h:h + 1] + a_src_all[h:h + 1, :]         # [N, N]
            e = jnp.where(e > 0, e, negative_slope * e)
            e = e + neg_mask

            # softmax over source nodes j (per target node i)
            m = jnp.max(e, axis=1, keepdims=True)
            p = jnp.exp(e - m)
            s = jnp.sum(p, axis=1, keepdims=True)
            attn = p * pl.reciprocal(s, approx=True)                  # EUP, frees VALU

            acc = acc + jnp.dot(attn, xw_all[:, h * f_out:(h + 1) * f_out],
                                preferred_element_type=jnp.float32)

        out = acc * (1.0 / heads) + bias                              # mean over heads + bias
        if apply_elu:                                                 # F.elu (alpha = 1.0)
            out = jnp.where(out > 0, out, jnp.exp(out) - 1.0)
        return out

    x = x_ref[...]
    h1 = gat_layer(x, w1_ref[...], asrc1_ref[...], adst1_ref[...], b1_ref[...],
                   apply_elu=True)
    out_ref[...] = gat_layer(h1, w2_ref[...], asrc2_ref[...], adst2_ref[...],
                             b2_ref[...], apply_elu=False)


def prep_layer_params(w, att_src, att_dst, bias):
    """Host-side packing of PyG-style GATConv params into lane-dense form.

    w       : [H, F_in, F_out]
    att_src : [H, F_out]
    att_dst : [H, F_out]
    bias    : [F_out]
    """
    heads, f_in, f_out = w.shape
    w_all = jnp.transpose(w, (1, 0, 2)).reshape(f_in, heads * f_out)
    asrc_bd = jnp.zeros((heads, heads * f_out), jnp.float32)
    adst_bd = jnp.zeros((heads * f_out, heads), jnp.float32)
    for h in range(heads):
        asrc_bd = asrc_bd.at[h, h * f_out:(h + 1) * f_out].set(att_src[h])
        adst_bd = adst_bd.at[h * f_out:(h + 1) * f_out, h].set(att_dst[h])
    return w_all, asrc_bd, adst_bd, bias.reshape(1, f_out)


def gat_forward(x, adj, packed_params, *, heads):
    (w1, s1, d1, b1), (w2, s2, d2, b2) = packed_params
    n = x.shape[0]
    out_feats = b2.shape[-1]
    kernel = functools.partial(gat2_kernel, heads=heads, negative_slope=0.2)
    return pl.pallas_call(
        kernel,
        out_shape=jax.ShapeDtypeStruct((n, out_feats), jnp.float32),
        in_specs=[pl.BlockSpec(memory_space=pltpu.MemorySpace.VMEM)] * 10,
        out_specs=pl.BlockSpec(memory_space=pltpu.MemorySpace.VMEM),
    )(x, adj, w1, s1, d1, b1, w2, s2, d2, b2)


if __name__ == "__main__":
    key = jax.random.PRNGKey(0)
    N = 16
    in_feats, h_feats, out_feats, heads = 8, 16, 8, 6

    ks = jax.random.split(key, 8)
    x = jax.random.normal(ks[0], (N, in_feats), jnp.float32)

    # deterministic bidirectional ring graph, edge_index[0]=src, edge_index[1]=dst
    idx = jnp.arange(N)
    src = jnp.concatenate([idx, (idx + 1) % N])
    dst = jnp.concatenate([(idx + 1) % N, idx])
    edge_index = jnp.stack([src, dst])                       # [2, 2N]

    # dense adjacency: adj[i, j] = 1 iff edge j -> i ; add self loops
    adj = jnp.zeros((N, N), jnp.float32)
    adj = adj.at[edge_index[1], edge_index[0]].set(1.0)
    adj = adj.at[idx, idx].set(1.0)

    def glorot(k, shape, fan_in, fan_out):
        lim = (6.0 / (fan_in + fan_out)) ** 0.5
        return jax.random.uniform(k, shape, jnp.float32, -lim, lim)

    # layer 1: in_feats -> h_feats, 6 heads  (PyG inits bias to zero)
    w1 = glorot(ks[1], (heads, in_feats, h_feats), in_feats, heads * h_feats)
    asrc1 = glorot(ks[2], (heads, h_feats), h_feats, 1)
    adst1 = glorot(ks[3], (heads, h_feats), h_feats, 1)
    b1 = jnp.zeros((h_feats,), jnp.float32)

    # layer 2: h_feats -> out_feats, 6 heads
    w2 = glorot(ks[4], (heads, h_feats, out_feats), h_feats, heads * out_feats)
    asrc2 = glorot(ks[5], (heads, out_feats), out_feats, 1)
    adst2 = glorot(ks[6], (heads, out_feats), out_feats, 1)
    b2 = jnp.zeros((out_feats,), jnp.float32)

    packed = (prep_layer_params(w1, asrc1, adst1, b1),
              prep_layer_params(w2, asrc2, adst2, b2))

    y = gat_forward(x, adj, packed, heads=heads)
    jax.block_until_ready(y)
    assert y.shape == (N, out_feats)
    print("KERNEL_OK")
</pallas_src>

<mosaic_0001>
module attributes {stable_mosaic.version = 11 : i64} {
  func.func @gat2_kernel(%arg0: memref<16x8xf32, #tpu.memory_space<vmem>>, %arg1: memref<16x16xf32, #tpu.memory_space<vmem>>, %arg2: memref<8x96xf32, #tpu.memory_space<vmem>>, %arg3: memref<6x96xf32, #tpu.memory_space<vmem>>, %arg4: memref<96x6xf32, #tpu.memory_space<vmem>>, %arg5: memref<1x16xf32, #tpu.memory_space<vmem>>, %arg6: memref<16x48xf32, #tpu.memory_space<vmem>>, %arg7: memref<6x48xf32, #tpu.memory_space<vmem>>, %arg8: memref<48x6xf32, #tpu.memory_space<vmem>>, %arg9: memref<1x8xf32, #tpu.memory_space<vmem>>, %arg10: memref<16x8xf32, #tpu.memory_space<vmem>>) attributes {dimension_semantics = [], scalar_prefetch = 0 : i64, scratch_operands = 0 : i64, tpu.core_type = #tpu.core_type<tc>} {
    %c0 = arith.constant 0 : index
    %c0_0 = arith.constant 0 : index
    %0 = vector.load %arg1[%c0, %c0_0] : memref<16x16xf32, #tpu.memory_space<vmem>>, vector<16x16xf32>
    %cst = arith.constant 0.000000e+00 : f32
    %1 = vector.broadcast %cst : f32 to vector<16x16xf32>
    %2 = arith.cmpf ogt, %0, %1 : vector<16x16xf32>
    %cst_1 = arith.constant 0.000000e+00 : f32
    %cst_2 = arith.constant -1.000000e+30 : f32
    %3 = vector.broadcast %cst_1 : f32 to vector<16x16xf32>
    %4 = vector.broadcast %cst_2 : f32 to vector<16x16xf32>
    %5 = arith.select %2, %3, %4 : vector<16x16xi1>, vector<16x16xf32>
    %c0_3 = arith.constant 0 : index
    %c0_4 = arith.constant 0 : index
    %6 = vector.load %arg0[%c0_3, %c0_4] : memref<16x8xf32, #tpu.memory_space<vmem>>, vector<16x8xf32>
    %c0_5 = arith.constant 0 : index
    %c0_6 = arith.constant 0 : index
    %7 = vector.load %arg2[%c0_5, %c0_6] : memref<8x96xf32, #tpu.memory_space<vmem>>, vector<8x96xf32>
    %c0_7 = arith.constant 0 : index
    %c0_8 = arith.constant 0 : index
    %8 = vector.load %arg3[%c0_7, %c0_8] : memref<6x96xf32, #tpu.memory_space<vmem>>, vector<6x96xf32>
    %c0_9 = arith.constant 0 : index
    %c0_10 = arith.constant 0 : index
    %9 = vector.load %arg4[%c0_9, %c0_10] : memref<96x6xf32, #tpu.memory_space<vmem>>, vector<96x6xf32>
    %c0_11 = arith.constant 0 : index
    %c0_12 = arith.constant 0 : index
    %10 = vector.load %arg5[%c0_11, %c0_12] : memref<1x16xf32, #tpu.memory_space<vmem>>, vector<1x16xf32>
    %cst_13 = arith.constant dense<0.000000e+00> : vector<16x96xf32>
    %11 = tpu.matmul %6, %7, %cst_13 {dimension_numbers = #tpu.dot_dimension_numbers<[1], [0], [0], [1], [0, 0, 1, 1], [], []>} : vector<16x8xf32>, vector<8x96xf32>, vector<16x96xf32> -> vector<16x96xf32>
    %cst_14 = arith.constant dense<0.000000e+00> : vector<16x6xf32>
    %12 = tpu.matmul %11, %9, %cst_14 {dimension_numbers = #tpu.dot_dimension_numbers<[1], [0], [0], [1], [0, 0, 1, 1], [], []>} : vector<16x96xf32>, vector<96x6xf32>, vector<16x6xf32> -> vector<16x6xf32>
    %cst_15 = arith.constant dense<0.000000e+00> : vector<6x16xf32>
    %13 = tpu.matmul %8, %11, %cst_15 {dimension_numbers = #tpu.dot_dimension_numbers<[1], [1], [0], [0], [0, 0, 1, 0], [], []>} : vector<6x96xf32>, vector<16x96xf32>, vector<6x16xf32> -> vector<6x16xf32>
    %cst_16 = arith.constant 0.000000e+00 : f32
    %14 = vector.broadcast %cst_16 : f32 to vector<16x16xf32>
    %15 = vector.extract_strided_slice %12 {offsets = [0, 0], sizes = [16, 1], strides = [1, 1]} : vector<16x6xf32> to vector<16x1xf32>
    %16 = vector.extract_strided_slice %13 {offsets = [0, 0], sizes = [1, 16], strides = [1, 1]} : vector<6x16xf32> to vector<1x16xf32>
    %17 = vector.broadcast %15 : vector<16x1xf32> to vector<16x16xf32>
    %18 = vector.broadcast %16 : vector<1x16xf32> to vector<16x16xf32>
    %19 = arith.addf %17, %18 : vector<16x16xf32>
    %cst_17 = arith.constant 0.000000e+00 : f32
    %20 = vector.broadcast %cst_17 : f32 to vector<16x16xf32>
    %21 = arith.cmpf ogt, %19, %20 : vector<16x16xf32>
    %cst_18 = arith.constant 2.000000e-01 : f32
    %22 = vector.broadcast %cst_18 : f32 to vector<16x16xf32>
    %23 = arith.mulf %22, %19 : vector<16x16xf32>
    %24 = arith.select %21, %19, %23 : vector<16x16xi1>, vector<16x16xf32>
    %25 = arith.addf %24, %5 : vector<16x16xf32>
    %cst_19 = arith.constant dense<0xFF800000> : vector<16xf32>
    %26 = vector.multi_reduction <maximumf>, %25, %cst_19 [1] : vector<16x16xf32> to vector<16xf32>
    %27 = vector.shape_cast %26 : vector<16xf32> to vector<16x1xf32>
    %28 = vector.broadcast %27 : vector<16x1xf32> to vector<16x16xf32>
    %29 = arith.subf %25, %28 : vector<16x16xf32>
    %30 = math.exp %29 : vector<16x16xf32>
    %cst_20 = arith.constant dense<0.000000e+00> : vector<16xf32>
    %31 = vector.multi_reduction <add>, %30, %cst_20 [1] : vector<16x16xf32> to vector<16xf32>
    %32 = vector.shape_cast %31 : vector<16xf32> to vector<16x1xf32>
    %33 = tpu.reciprocal %32 {approx = true} : vector<16x1xf32> -> vector<16x1xf32>
    %34 = vector.broadcast %33 : vector<16x1xf32> to vector<16x16xf32>
    %35 = arith.mulf %30, %34 : vector<16x16xf32>
    %36 = vector.extract_strided_slice %11 {offsets = [0, 0], sizes = [16, 16], strides = [1, 1]} : vector<16x96xf32> to vector<16x16xf32>
    %cst_21 = arith.constant dense<0.000000e+00> : vector<16x16xf32>
    %37 = tpu.matmul %35, %36, %cst_21 {dimension_numbers = #tpu.dot_dimension_numbers<[1], [0], [0], [1], [0, 0, 1, 1], [], []>} : vector<16x16xf32>, vector<16x16xf32>, vector<16x16xf32> -> vector<16x16xf32>
    %38 = arith.addf %14, %37 : vector<16x16xf32>
    %39 = vector.extract_strided_slice %12 {offsets = [0, 1], sizes = [16, 1], strides = [1, 1]} : vector<16x6xf32> to vector<16x1xf32>
    %40 = vector.extract_strided_slice %13 {offsets = [1, 0], sizes = [1, 16], strides = [1, 1]} : vector<6x16xf32> to vector<1x16xf32>
    %41 = vector.broadcast %39 : vector<16x1xf32> to vector<16x16xf32>
    %42 = vector.broadcast %40 : vector<1x16xf32> to vector<16x16xf32>
    %43 = arith.addf %41, %42 : vector<16x16xf32>
    %cst_22 = arith.constant 0.000000e+00 : f32
    %44 = vector.broadcast %cst_22 : f32 to vector<16x16xf32>
    %45 = arith.cmpf ogt, %43, %44 : vector<16x16xf32>
    %cst_23 = arith.constant 2.000000e-01 : f32
    %46 = vector.broadcast %cst_23 : f32 to vector<16x16xf32>
    %47 = arith.mulf %46, %43 : vector<16x16xf32>
    %48 = arith.select %45, %43, %47 : vector<16x16xi1>, vector<16x16xf32>
    %49 = arith.addf %48, %5 : vector<16x16xf32>
    %cst_24 = arith.constant dense<0xFF800000> : vector<16xf32>
    %50 = vector.multi_reduction <maximumf>, %49, %cst_24 [1] : vector<16x16xf32> to vector<16xf32>
    %51 = vector.shape_cast %50 : vector<16xf32> to vector<16x1xf32>
    %52 = vector.broadcast %51 : vector<16x1xf32> to vector<16x16xf32>
    %53 = arith.subf %49, %52 : vector<16x16xf32>
    %54 = math.exp %53 : vector<16x16xf32>
    %cst_25 = arith.constant dense<0.000000e+00> : vector<16xf32>
    %55 = vector.multi_reduction <add>, %54, %cst_25 [1] : vector<16x16xf32> to vector<16xf32>
    %56 = vector.shape_cast %55 : vector<16xf32> to vector<16x1xf32>
    %57 = tpu.reciprocal %56 {approx = true} : vector<16x1xf32> -> vector<16x1xf32>
    %58 = vector.broadcast %57 : vector<16x1xf32> to vector<16x16xf32>
    %59 = arith.mulf %54, %58 : vector<16x16xf32>
    %60 = vector.extract_strided_slice %11 {offsets = [0, 16], sizes = [16, 16], strides = [1, 1]} : vector<16x96xf32> to vector<16x16xf32>
    %cst_26 = arith.constant dense<0.000000e+00> : vector<16x16xf32>
    %61 = tpu.matmul %59, %60, %cst_26 {dimension_numbers = #tpu.dot_dimension_numbers<[1], [0], [0], [1], [0, 0, 1, 1], [], []>} : vector<16x16xf32>, vector<16x16xf32>, vector<16x16xf32> -> vector<16x16xf32>
    %62 = arith.addf %38, %61 : vector<16x16xf32>
    %63 = vector.extract_strided_slice %12 {offsets = [0, 2], sizes = [16, 1], strides = [1, 1]} : vector<16x6xf32> to vector<16x1xf32>
    %64 = vector.extract_strided_slice %13 {offsets = [2, 0], sizes = [1, 16], strides = [1, 1]} : vector<6x16xf32> to vector<1x16xf32>
    %65 = vector.broadcast %63 : vector<16x1xf32> to vector<16x16xf32>
    %66 = vector.broadcast %64 : vector<1x16xf32> to vector<16x16xf32>
    %67 = arith.addf %65, %66 : vector<16x16xf32>
    %cst_27 = arith.constant 0.000000e+00 : f32
    %68 = vector.broadcast %cst_27 : f32 to vector<16x16xf32>
    %69 = arith.cmpf ogt, %67, %68 : vector<16x16xf32>
    %cst_28 = arith.constant 2.000000e-01 : f32
    %70 = vector.broadcast %cst_28 : f32 to vector<16x16xf32>
    %71 = arith.mulf %70, %67 : vector<16x16xf32>
    %72 = arith.select %69, %67, %71 : vector<16x16xi1>, vector<16x16xf32>
    %73 = arith.addf %72, %5 : vector<16x16xf32>
    %cst_29 = arith.constant dense<0xFF800000> : vector<16xf32>
    %74 = vector.multi_reduction <maximumf>, %73, %cst_29 [1] : vector<16x16xf32> to vector<16xf32>
    %75 = vector.shape_cast %74 : vector<16xf32> to vector<16x1xf32>
    %76 = vector.broadcast %75 : vector<16x1xf32> to vector<16x16xf32>
    %77 = arith.subf %73, %76 : vector<16x16xf32>
    %78 = math.exp %77 : vector<16x16xf32>
    %cst_30 = arith.constant dense<0.000000e+00> : vector<16xf32>
    %79 = vector.multi_reduction <add>, %78, %cst_30 [1] : vector<16x16xf32> to vector<16xf32>
    %80 = vector.shape_cast %79 : vector<16xf32> to vector<16x1xf32>
    %81 = tpu.reciprocal %80 {approx = true} : vector<16x1xf32> -> vector<16x1xf32>
    %82 = vector.broadcast %81 : vector<16x1xf32> to vector<16x16xf32>
    %83 = arith.mulf %78, %82 : vector<16x16xf32>
    %84 = vector.extract_strided_slice %11 {offsets = [0, 32], sizes = [16, 16], strides = [1, 1]} : vector<16x96xf32> to vector<16x16xf32>
    %cst_31 = arith.constant dense<0.000000e+00> : vector<16x16xf32>
    %85 = tpu.matmul %83, %84, %cst_31 {dimension_numbers = #tpu.dot_dimension_numbers<[1], [0], [0], [1], [0, 0, 1, 1], [], []>} : vector<16x16xf32>, vector<16x16xf32>, vector<16x16xf32> -> vector<16x16xf32>
    %86 = arith.addf %62, %85 : vector<16x16xf32>
    %87 = vector.extract_strided_slice %12 {offsets = [0, 3], sizes = [16, 1], strides = [1, 1]} : vector<16x6xf32> to vector<16x1xf32>
    %88 = vector.extract_strided_slice %13 {offsets = [3, 0], sizes = [1, 16], strides = [1, 1]} : vector<6x16xf32> to vector<1x16xf32>
    %89 = vector.broadcast %87 : vector<16x1xf32> to vector<16x16xf32>
    %90 = vector.broadcast %88 : vector<1x16xf32> to vector<16x16xf32>
    %91 = arith.addf %89, %90 : vector<16x16xf32>
    %cst_32 = arith.constant 0.000000e+00 : f32
    %92 = vector.broadcast %cst_32 : f32 to vector<16x16xf32>
    %93 = arith.cmpf ogt, %91, %92 : vector<16x16xf32>
    %cst_33 = arith.constant 2.000000e-01 : f32
    %94 = vector.broadcast %cst_33 : f32 to vector<16x16xf32>
    %95 = arith.mulf %94, %91 : vector<16x16xf32>
    %96 = arith.select %93, %91, %95 : vector<16x16xi1>, vector<16x16xf32>
    %97 = arith.addf %96, %5 : vector<16x16xf32>
    %cst_34 = arith.constant dense<0xFF800000> : vector<16xf32>
    %98 = vector.multi_reduction <maximumf>, %97, %cst_34 [1] : vector<16x16xf32> to vector<16xf32>
    %99 = vector.shape_cast %98 : vector<16xf32> to vector<16x1xf32>
    %100 = vector.broadcast %99 : vector<16x1xf32> to vector<16x16xf32>
    %101 = arith.subf %97, %100 : vector<16x16xf32>
    %102 = math.exp %101 : vector<16x16xf32>
    %cst_35 = arith.constant dense<0.000000e+00> : vector<16xf32>
    %103 = vector.multi_reduction <add>, %102, %cst_35 [1] : vector<16x16xf32> to vector<16xf32>
    %104 = vector.shape_cast %103 : vector<16xf32> to vector<16x1xf32>
    %105 = tpu.reciprocal %104 {approx = true} : vector<16x1xf32> -> vector<16x1xf32>
    %106 = vector.broadcast %105 : vector<16x1xf32> to vector<16x16xf32>
    %107 = arith.mulf %102, %106 : vector<16x16xf32>
    %108 = vector.extract_strided_slice %11 {offsets = [0, 48], sizes = [16, 16], strides = [1, 1]} : vector<16x96xf32> to vector<16x16xf32>
    %cst_36 = arith.constant dense<0.000000e+00> : vector<16x16xf32>
    %109 = tpu.matmul %107, %108, %cst_36 {dimension_numbers = #tpu.dot_dimension_numbers<[1], [0], [0], [1], [0, 0, 1, 1], [], []>} : vector<16x16xf32>, vector<16x16xf32>, vector<16x16xf32> -> vector<16x16xf32>
    %110 = arith.addf %86, %109 : vector<16x16xf32>
    %111 = vector.extract_strided_slice %12 {offsets = [0, 4], sizes = [16, 1], strides = [1, 1]} : vector<16x6xf32> to vector<16x1xf32>
    %112 = vector.extract_strided_slice %13 {offsets = [4, 0], sizes = [1, 16], strides = [1, 1]} : vector<6x16xf32> to vector<1x16xf32>
    %113 = vector.broadcast %111 : vector<16x1xf32> to vector<16x16xf32>
    %114 = vector.broadcast %112 : vector<1x16xf32> to vector<16x16xf32>
    %115 = arith.addf %113, %114 : vector<16x16xf32>
    %cst_37 = arith.constant 0.000000e+00 : f32
    %116 = vector.broadcast %cst_37 : f32 to vector<16x16xf32>
    %117 = arith.cmpf ogt, %115, %116 : vector<16x16xf32>
    %cst_38 = arith.constant 2.000000e-01 : f32
    %118 = vector.broadcast %cst_38 : f32 to vector<16x16xf32>
    %119 = arith.mulf %118, %115 : vector<16x16xf32>
    %120 = arith.select %117, %115, %119 : vector<16x16xi1>, vector<16x16xf32>
    %121 = arith.addf %120, %5 : vector<16x16xf32>
    %cst_39 = arith.constant dense<0xFF800000> : vector<16xf32>
    %122 = vector.multi_reduction <maximumf>, %121, %cst_39 [1] : vector<16x16xf32> to vector<16xf32>
    %123 = vector.shape_cast %122 : vector<16xf32> to vector<16x1xf32>
    %124 = vector.broadcast %123 : vector<16x1xf32> to vector<16x16xf32>
    %125 = arith.subf %121, %124 : vector<16x16xf32>
    %126 = math.exp %125 : vector<16x16xf32>
    %cst_40 = arith.constant dense<0.000000e+00> : vector<16xf32>
    %127 = vector.multi_reduction <add>, %126, %cst_40 [1] : vector<16x16xf32> to vector<16xf32>
    %128 = vector.shape_cast %127 : vector<16xf32> to vector<16x1xf32>
    %129 = tpu.reciprocal %128 {approx = true} : vector<16x1xf32> -> vector<16x1xf32>
    %130 = vector.broadcast %129 : vector<16x1xf32> to vector<16x16xf32>
    %131 = arith.mulf %126, %130 : vector<16x16xf32>
    %132 = vector.extract_strided_slice %11 {offsets = [0, 64], sizes = [16, 16], strides = [1, 1]} : vector<16x96xf32> to vector<16x16xf32>
    %cst_41 = arith.constant dense<0.000000e+00> : vector<16x16xf32>
    %133 = tpu.matmul %131, %132, %cst_41 {dimension_numbers = #tpu.dot_dimension_numbers<[1], [0], [0], [1], [0, 0, 1, 1], [], []>} : vector<16x16xf32>, vector<16x16xf32>, vector<16x16xf32> -> vector<16x16xf32>
    %134 = arith.addf %110, %133 : vector<16x16xf32>
    %135 = vector.extract_strided_slice %12 {offsets = [0, 5], sizes = [16, 1], strides = [1, 1]} : vector<16x6xf32> to vector<16x1xf32>
    %136 = vector.extract_strided_slice %13 {offsets = [5, 0], sizes = [1, 16], strides = [1, 1]} : vector<6x16xf32> to vector<1x16xf32>
    %137 = vector.broadcast %135 : vector<16x1xf32> to vector<16x16xf32>
    %138 = vector.broadcast %136 : vector<1x16xf32> to vector<16x16xf32>
    %139 = arith.addf %137, %138 : vector<16x16xf32>
    %cst_42 = arith.constant 0.000000e+00 : f32
    %140 = vector.broadcast %cst_42 : f32 to vector<16x16xf32>
    %141 = arith.cmpf ogt, %139, %140 : vector<16x16xf32>
    %cst_43 = arith.constant 2.000000e-01 : f32
    %142 = vector.broadcast %cst_43 : f32 to vector<16x16xf32>
    %143 = arith.mulf %142, %139 : vector<16x16xf32>
    %144 = arith.select %141, %139, %143 : vector<16x16xi1>, vector<16x16xf32>
    %145 = arith.addf %144, %5 : vector<16x16xf32>
    %cst_44 = arith.constant dense<0xFF800000> : vector<16xf32>
    %146 = vector.multi_reduction <maximumf>, %145, %cst_44 [1] : vector<16x16xf32> to vector<16xf32>
    %147 = vector.shape_cast %146 : vector<16xf32> to vector<16x1xf32>
    %148 = vector.broadcast %147 : vector<16x1xf32> to vector<16x16xf32>
    %149 = arith.subf %145, %148 : vector<16x16xf32>
    %150 = math.exp %149 : vector<16x16xf32>
    %cst_45 = arith.constant dense<0.000000e+00> : vector<16xf32>
    %151 = vector.multi_reduction <add>, %150, %cst_45 [1] : vector<16x16xf32> to vector<16xf32>
    %152 = vector.shape_cast %151 : vector<16xf32> to vector<16x1xf32>
    %153 = tpu.reciprocal %152 {approx = true} : vector<16x1xf32> -> vector<16x1xf32>
    %154 = vector.broadcast %153 : vector<16x1xf32> to vector<16x16xf32>
    %155 = arith.mulf %150, %154 : vector<16x16xf32>
    %156 = vector.extract_strided_slice %11 {offsets = [0, 80], sizes = [16, 16], strides = [1, 1]} : vector<16x96xf32> to vector<16x16xf32>
    %cst_46 = arith.constant dense<0.000000e+00> : vector<16x16xf32>
    %157 = tpu.matmul %155, %156, %cst_46 {dimension_numbers = #tpu.dot_dimension_numbers<[1], [0], [0], [1], [0, 0, 1, 1], [], []>} : vector<16x16xf32>, vector<16x16xf32>, vector<16x16xf32> -> vector<16x16xf32>
    %158 = arith.addf %134, %157 : vector<16x16xf32>
    %cst_47 = arith.constant 0.166666672 : f32
    %159 = vector.broadcast %cst_47 : f32 to vector<16x16xf32>
    %160 = arith.mulf %158, %159 : vector<16x16xf32>
    %161 = vector.broadcast %10 : vector<1x16xf32> to vector<16x16xf32>
    %162 = arith.addf %160, %161 : vector<16x16xf32>
    %cst_48 = arith.constant 0.000000e+00 : f32
    %163 = vector.broadcast %cst_48 : f32 to vector<16x16xf32>
    %164 = arith.cmpf ogt, %162, %163 : vector<16x16xf32>
    %165 = math.exp %162 : vector<16x16xf32>
    %cst_49 = arith.constant 1.000000e+00 : f32
    %166 = vector.broadcast %cst_49 : f32 to vector<16x16xf32>
    %167 = arith.subf %165, %166 : vector<16x16xf32>
    %168 = arith.select %164, %162, %167 : vector<16x16xi1>, vector<16x16xf32>
    %c0_50 = arith.constant 0 : index
    %c0_51 = arith.constant 0 : index
    %169 = vector.load %arg6[%c0_50, %c0_51] : memref<16x48xf32, #tpu.memory_space<vmem>>, vector<16x48xf32>
    %c0_52 = arith.constant 0 : index
    %c0_53 = arith.constant 0 : index
    %170 = vector.load %arg7[%c0_52, %c0_53] : memref<6x48xf32, #tpu.memory_space<vmem>>, vector<6x48xf32>
    %c0_54 = arith.constant 0 : index
    %c0_55 = arith.constant 0 : index
    %171 = vector.load %arg8[%c0_54, %c0_55] : memref<48x6xf32, #tpu.memory_space<vmem>>, vector<48x6xf32>
    %c0_56 = arith.constant 0 : index
    %c0_57 = arith.constant 0 : index
    %172 = vector.load %arg9[%c0_56, %c0_57] : memref<1x8xf32, #tpu.memory_space<vmem>>, vector<1x8xf32>
    %cst_58 = arith.constant dense<0.000000e+00> : vector<16x48xf32>
    %173 = tpu.matmul %168, %169, %cst_58 {dimension_numbers = #tpu.dot_dimension_numbers<[1], [0], [0], [1], [0, 0, 1, 1], [], []>} : vector<16x16xf32>, vector<16x48xf32>, vector<16x48xf32> -> vector<16x48xf32>
    %cst_59 = arith.constant dense<0.000000e+00> : vector<16x6xf32>
    %174 = tpu.matmul %173, %171, %cst_59 {dimension_numbers = #tpu.dot_dimension_numbers<[1], [0], [0], [1], [0, 0, 1, 1], [], []>} : vector<16x48xf32>, vector<48x6xf32>, vector<16x6xf32> -> vector<16x6xf32>
    %cst_60 = arith.constant dense<0.000000e+00> : vector<6x16xf32>
    %175 = tpu.matmul %170, %173, %cst_60 {dimension_numbers = #tpu.dot_dimension_numbers<[1], [1], [0], [0], [0, 0, 1, 0], [], []>} : vector<6x48xf32>, vector<16x48xf32>, vector<6x16xf32> -> vector<6x16xf32>
    %cst_61 = arith.constant 0.000000e+00 : f32
    %176 = vector.broadcast %cst_61 : f32 to vector<16x8xf32>
    %177 = vector.extract_strided_slice %174 {offsets = [0, 0], sizes = [16, 1], strides = [1, 1]} : vector<16x6xf32> to vector<16x1xf32>
    %178 = vector.extract_strided_slice %175 {offsets = [0, 0], sizes = [1, 16], strides = [1, 1]} : vector<6x16xf32> to vector<1x16xf32>
    %179 = vector.broadcast %177 : vector<16x1xf32> to vector<16x16xf32>
    %180 = vector.broadcast %178 : vector<1x16xf32> to vector<16x16xf32>
    %181 = arith.addf %179, %180 : vector<16x16xf32>
    %cst_62 = arith.constant 0.000000e+00 : f32
    %182 = vector.broadcast %cst_62 : f32 to vector<16x16xf32>
    %183 = arith.cmpf ogt, %181, %182 : vector<16x16xf32>
    %cst_63 = arith.constant 2.000000e-01 : f32
    %184 = vector.broadcast %cst_63 : f32 to vector<16x16xf32>
    %185 = arith.mulf %184, %181 : vector<16x16xf32>
    %186 = arith.select %183, %181, %185 : vector<16x16xi1>, vector<16x16xf32>
    %187 = arith.addf %186, %5 : vector<16x16xf32>
    %cst_64 = arith.constant dense<0xFF800000> : vector<16xf32>
    %188 = vector.multi_reduction <maximumf>, %187, %cst_64 [1] : vector<16x16xf32> to vector<16xf32>
    %189 = vector.shape_cast %188 : vector<16xf32> to vector<16x1xf32>
    %190 = vector.broadcast %189 : vector<16x1xf32> to vector<16x16xf32>
    %191 = arith.subf %187, %190 : vector<16x16xf32>
    %192 = math.exp %191 : vector<16x16xf32>
    %cst_65 = arith.constant dense<0.000000e+00> : vector<16xf32>
    %193 = vector.multi_reduction <add>, %192, %cst_65 [1] : vector<16x16xf32> to vector<16xf32>
    %194 = vector.shape_cast %193 : vector<16xf32> to vector<16x1xf32>
    %195 = tpu.reciprocal %194 {approx = true} : vector<16x1xf32> -> vector<16x1xf32>
    %196 = vector.broadcast %195 : vector<16x1xf32> to vector<16x16xf32>
    %197 = arith.mulf %192, %196 : vector<16x16xf32>
    %198 = vector.extract_strided_slice %173 {offsets = [0, 0], sizes = [16, 8], strides = [1, 1]} : vector<16x48xf32> to vector<16x8xf32>
    %cst_66 = arith.constant dense<0.000000e+00> : vector<16x8xf32>
    %199 = tpu.matmul %197, %198, %cst_66 {dimension_numbers = #tpu.dot_dimension_numbers<[1], [0], [0], [1], [0, 0, 1, 1], [], []>} : vector<16x16xf32>, vector<16x8xf32>, vector<16x8xf32> -> vector<16x8xf32>
    %200 = arith.addf %176, %199 : vector<16x8xf32>
    %201 = vector.extract_strided_slice %174 {offsets = [0, 1], sizes = [16, 1], strides = [1, 1]} : vector<16x6xf32> to vector<16x1xf32>
    %202 = vector.extract_strided_slice %175 {offsets = [1, 0], sizes = [1, 16], strides = [1, 1]} : vector<6x16xf32> to vector<1x16xf32>
    %203 = vector.broadcast %201 : vector<16x1xf32> to vector<16x16xf32>
    %204 = vector.broadcast %202 : vector<1x16xf32> to vector<16x16xf32>
    %205 = arith.addf %203, %204 : vector<16x16xf32>
    %cst_67 = arith.constant 0.000000e+00 : f32
    %206 = vector.broadcast %cst_67 : f32 to vector<16x16xf32>
    %207 = arith.cmpf ogt, %205, %206 : vector<16x16xf32>
    %cst_68 = arith.constant 2.000000e-01 : f32
    %208 = vector.broadcast %cst_68 : f32 to vector<16x16xf32>
    %209 = arith.mulf %208, %205 : vector<16x16xf32>
    %210 = arith.select %207, %205, %209 : vector<16x16xi1>, vector<16x16xf32>
    %211 = arith.addf %210, %5 : vector<16x16xf32>
    %cst_69 = arith.constant dense<0xFF800000> : vector<16xf32>
    %212 = vector.multi_reduction <maximumf>, %211, %cst_69 [1] : vector<16x16xf32> to vector<16xf32>
    %213 = vector.shape_cast %212 : vector<16xf32> to vector<16x1xf32>
    %214 = vector.broadcast %213 : vector<16x1xf32> to vector<16x16xf32>
    %215 = arith.subf %211, %214 : vector<16x16xf32>
    %216 = math.exp %215 : vector<16x16xf32>
    %cst_70 = arith.constant dense<0.000000e+00> : vector<16xf32>
    %217 = vector.multi_reduction <add>, %216, %cst_70 [1] : vector<16x16xf32> to vector<16xf32>
    %218 = vector.shape_cast %217 : vector<16xf32> to vector<16x1xf32>
    %219 = tpu.reciprocal %218 {approx = true} : vector<16x1xf32> -> vector<16x1xf32>
    %220 = vector.broadcast %219 : vector<16x1xf32> to vector<16x16xf32>
    %221 = arith.mulf %216, %220 : vector<16x16xf32>
    %222 = vector.extract_strided_slice %173 {offsets = [0, 8], sizes = [16, 8], strides = [1, 1]} : vector<16x48xf32> to vector<16x8xf32>
    %cst_71 = arith.constant dense<0.000000e+00> : vector<16x8xf32>
    %223 = tpu.matmul %221, %222, %cst_71 {dimension_numbers = #tpu.dot_dimension_numbers<[1], [0], [0], [1], [0, 0, 1, 1], [], []>} : vector<16x16xf32>, vector<16x8xf32>, vector<16x8xf32> -> vector<16x8xf32>
    %224 = arith.addf %200, %223 : vector<16x8xf32>
    %225 = vector.extract_strided_slice %174 {offsets = [0, 2], sizes = [16, 1], strides = [1, 1]} : vector<16x6xf32> to vector<16x1xf32>
    %226 = vector.extract_strided_slice %175 {offsets = [2, 0], sizes = [1, 16], strides = [1, 1]} : vector<6x16xf32> to vector<1x16xf32>
    %227 = vector.broadcast %225 : vector<16x1xf32> to vector<16x16xf32>
    %228 = vector.broadcast %226 : vector<1x16xf32> to vector<16x16xf32>
    %229 = arith.addf %227, %228 : vector<16x16xf32>
    %cst_72 = arith.constant 0.000000e+00 : f32
    %230 = vector.broadcast %cst_72 : f32 to vector<16x16xf32>
    %231 = arith.cmpf ogt, %229, %230 : vector<16x16xf32>
    %cst_73 = arith.constant 2.000000e-01 : f32
    %232 = vector.broadcast %cst_73 : f32 to vector<16x16xf32>
    %233 = arith.mulf %232, %229 : vector<16x16xf32>
    %234 = arith.select %231, %229, %233 : vector<16x16xi1>, vector<16x16xf32>
    %235 = arith.addf %234, %5 : vector<16x16xf32>
    %cst_74 = arith.constant dense<0xFF800000> : vector<16xf32>
    %236 = vector.multi_reduction <maximumf>, %235, %cst_74 [1] : vector<16x16xf32> to vector<16xf32>
    %237 = vector.shape_cast %236 : vector<16xf32> to vector<16x1xf32>
    %238 = vector.broadcast %237 : vector<16x1xf32> to vector<16x16xf32>
    %239 = arith.subf %235, %238 : vector<16x16xf32>
    %240 = math.exp %239 : vector<16x16xf32>
    %cst_75 = arith.constant dense<0.000000e+00> : vector<16xf32>
    %241 = vector.multi_reduction <add>, %240, %cst_75 [1] : vector<16x16xf32> to vector<16xf32>
    %242 = vector.shape_cast %241 : vector<16xf32> to vector<16x1xf32>
    %243 = tpu.reciprocal %242 {approx = true} : vector<16x1xf32> -> vector<16x1xf32>
    %244 = vector.broadcast %243 : vector<16x1xf32> to vector<16x16xf32>
    %245 = arith.mulf %240, %244 : vector<16x16xf32>
    %246 = vector.extract_strided_slice %173 {offsets = [0, 16], sizes = [16, 8], strides = [1, 1]} : vector<16x48xf32> to vector<16x8xf32>
    %cst_76 = arith.constant dense<0.000000e+00> : vector<16x8xf32>
    %247 = tpu.matmul %245, %246, %cst_76 {dimension_numbers = #tpu.dot_dimension_numbers<[1], [0], [0], [1], [0, 0, 1, 1], [], []>} : vector<16x16xf32>, vector<16x8xf32>, vector<16x8xf32> -> vector<16x8xf32>
    %248 = arith.addf %224, %247 : vector<16x8xf32>
    %249 = vector.extract_strided_slice %174 {offsets = [0, 3], sizes = [16, 1], strides = [1, 1]} : vector<16x6xf32> to vector<16x1xf32>
    %250 = vector.extract_strided_slice %175 {offsets = [3, 0], sizes = [1, 16], strides = [1, 1]} : vector<6x16xf32> to vector<1x16xf32>
    %251 = vector.broadcast %249 : vector<16x1xf32> to vector<16x16xf32>
    %252 = vector.broadcast %250 : vector<1x16xf32> to vector<16x16xf32>
    %253 = arith.addf %251, %252 : vector<16x16xf32>
    %cst_77 = arith.constant 0.000000e+00 : f32
    %254 = vector.broadcast %cst_77 : f32 to vector<16x16xf32>
    %255 = arith.cmpf ogt, %253, %254 : vector<16x16xf32>
    %cst_78 = arith.constant 2.000000e-01 : f32
    %256 = vector.broadcast %cst_78 : f32 to vector<16x16xf32>
    %257 = arith.mulf %256, %253 : vector<16x16xf32>
    %258 = arith.select %255, %253, %257 : vector<16x16xi1>, vector<16x16xf32>
    %259 = arith.addf %258, %5 : vector<16x16xf32>
    %cst_79 = arith.constant dense<0xFF800000> : vector<16xf32>
    %260 = vector.multi_reduction <maximumf>, %259, %cst_79 [1] : vector<16x16xf32> to vector<16xf32>
    %261 = vector.shape_cast %260 : vector<16xf32> to vector<16x1xf32>
    %262 = vector.broadcast %261 : vector<16x1xf32> to vector<16x16xf32>
    %263 = arith.subf %259, %262 : vector<16x16xf32>
    %264 = math.exp %263 : vector<16x16xf32>
    %cst_80 = arith.constant dense<0.000000e+00> : vector<16xf32>
    %265 = vector.multi_reduction <add>, %264, %cst_80 [1] : vector<16x16xf32> to vector<16xf32>
    %266 = vector.shape_cast %265 : vector<16xf32> to vector<16x1xf32>
    %267 = tpu.reciprocal %266 {approx = true} : vector<16x1xf32> -> vector<16x1xf32>
    %268 = vector.broadcast %267 : vector<16x1xf32> to vector<16x16xf32>
    %269 = arith.mulf %264, %268 : vector<16x16xf32>
    %270 = vector.extract_strided_slice %173 {offsets = [0, 24], sizes = [16, 8], strides = [1, 1]} : vector<16x48xf32> to vector<16x8xf32>
    %cst_81 = arith.constant dense<0.000000e+00> : vector<16x8xf32>
    %271 = tpu.matmul %269, %270, %cst_81 {dimension_numbers = #tpu.dot_dimension_numbers<[1], [0], [0], [1], [0, 0, 1, 1], [], []>} : vector<16x16xf32>, vector<16x8xf32>, vector<16x8xf32> -> vector<16x8xf32>
    %272 = arith.addf %248, %271 : vector<16x8xf32>
    %273 = vector.extract_strided_slice %174 {offsets = [0, 4], sizes = [16, 1], strides = [1, 1]} : vector<16x6xf32> to vector<16x1xf32>
    %274 = vector.extract_strided_slice %175 {offsets = [4, 0], sizes = [1, 16], strides = [1, 1]} : vector<6x16xf32> to vector<1x16xf32>
    %275 = vector.broadcast %273 : vector<16x1xf32> to vector<16x16xf32>
    %276 = vector.broadcast %274 : vector<1x16xf32> to vector<16x16xf32>
    %277 = arith.addf %275, %276 : vector<16x16xf32>
    %cst_82 = arith.constant 0.000000e+00 : f32
    %278 = vector.broadcast %cst_82 : f32 to vector<16x16xf32>
    %279 = arith.cmpf ogt, %277, %278 : vector<16x16xf32>
    %cst_83 = arith.constant 2.000000e-01 : f32
    %280 = vector.broadcast %cst_83 : f32 to vector<16x16xf32>
    %281 = arith.mulf %280, %277 : vector<16x16xf32>
    %282 = arith.select %279, %277, %281 : vector<16x16xi1>, vector<16x16xf32>
    %283 = arith.addf %282, %5 : vector<16x16xf32>
    %cst_84 = arith.constant dense<0xFF800000> : vector<16xf32>
    %284 = vector.multi_reduction <maximumf>, %283, %cst_84 [1] : vector<16x16xf32> to vector<16xf32>
    %285 = vector.shape_cast %284 : vector<16xf32> to vector<16x1xf32>
    %286 = vector.broadcast %285 : vector<16x1xf32> to vector<16x16xf32>
    %287 = arith.subf %283, %286 : vector<16x16xf32>
    %288 = math.exp %287 : vector<16x16xf32>
    %cst_85 = arith.constant dense<0.000000e+00> : vector<16xf32>
    %289 = vector.multi_reduction <add>, %288, %cst_85 [1] : vector<16x16xf32> to vector<16xf32>
    %290 = vector.shape_cast %289 : vector<16xf32> to vector<16x1xf32>
    %291 = tpu.reciprocal %290 {approx = true} : vector<16x1xf32> -> vector<16x1xf32>
    %292 = vector.broadcast %291 : vector<16x1xf32> to vector<16x16xf32>
    %293 = arith.mulf %288, %292 : vector<16x16xf32>
    %294 = vector.extract_strided_slice %173 {offsets = [0, 32], sizes = [16, 8], strides = [1, 1]} : vector<16x48xf32> to vector<16x8xf32>
    %cst_86 = arith.constant dense<0.000000e+00> : vector<16x8xf32>
    %295 = tpu.matmul %293, %294, %cst_86 {dimension_numbers = #tpu.dot_dimension_numbers<[1], [0], [0], [1], [0, 0, 1, 1], [], []>} : vector<16x16xf32>, vector<16x8xf32>, vector<16x8xf32> -> vector<16x8xf32>
    %296 = arith.addf %272, %295 : vector<16x8xf32>
    %297 = vector.extract_strided_slice %174 {offsets = [0, 5], sizes = [16, 1], strides = [1, 1]} : vector<16x6xf32> to vector<16x1xf32>
    %298 = vector.extract_strided_slice %175 {offsets = [5, 0], sizes = [1, 16], strides = [1, 1]} : vector<6x16xf32> to vector<1x16xf32>
    %299 = vector.broadcast %297 : vector<16x1xf32> to vector<16x16xf32>
    %300 = vector.broadcast %298 : vector<1x16xf32> to vector<16x16xf32>
    %301 = arith.addf %299, %300 : vector<16x16xf32>
    %cst_87 = arith.constant 0.000000e+00 : f32
    %302 = vector.broadcast %cst_87 : f32 to vector<16x16xf32>
    %303 = arith.cmpf ogt, %301, %302 : vector<16x16xf32>
    %cst_88 = arith.constant 2.000000e-01 : f32
    %304 = vector.broadcast %cst_88 : f32 to vector<16x16xf32>
    %305 = arith.mulf %304, %301 : vector<16x16xf32>
    %306 = arith.select %303, %301, %305 : vector<16x16xi1>, vector<16x16xf32>
    %307 = arith.addf %306, %5 : vector<16x16xf32>
    %cst_89 = arith.constant dense<0xFF800000> : vector<16xf32>
    %308 = vector.multi_reduction <maximumf>, %307, %cst_89 [1] : vector<16x16xf32> to vector<16xf32>
    %309 = vector.shape_cast %308 : vector<16xf32> to vector<16x1xf32>
    %310 = vector.broadcast %309 : vector<16x1xf32> to vector<16x16xf32>
    %311 = arith.subf %307, %310 : vector<16x16xf32>
    %312 = math.exp %311 : vector<16x16xf32>
    %cst_90 = arith.constant dense<0.000000e+00> : vector<16xf32>
    %313 = vector.multi_reduction <add>, %312, %cst_90 [1] : vector<16x16xf32> to vector<16xf32>
    %314 = vector.shape_cast %313 : vector<16xf32> to vector<16x1xf32>
    %315 = tpu.reciprocal %314 {approx = true} : vector<16x1xf32> -> vector<16x1xf32>
    %316 = vector.broadcast %315 : vector<16x1xf32> to vector<16x16xf32>
    %317 = arith.mulf %312, %316 : vector<16x16xf32>
    %318 = vector.extract_strided_slice %173 {offsets = [0, 40], sizes = [16, 8], strides = [1, 1]} : vector<16x48xf32> to vector<16x8xf32>
    %cst_91 = arith.constant dense<0.000000e+00> : vector<16x8xf32>
    %319 = tpu.matmul %317, %318, %cst_91 {dimension_numbers = #tpu.dot_dimension_numbers<[1], [0], [0], [1], [0, 0, 1, 1], [], []>} : vector<16x16xf32>, vector<16x8xf32>, vector<16x8xf32> -> vector<16x8xf32>
    %320 = arith.addf %296, %319 : vector<16x8xf32>
    %cst_92 = arith.constant 0.166666672 : f32
    %321 = vector.broadcast %cst_92 : f32 to vector<16x8xf32>
    %322 = arith.mulf %320, %321 : vector<16x8xf32>
    %323 = vector.broadcast %172 : vector<1x8xf32> to vector<16x8xf32>
    %324 = arith.addf %322, %323 : vector<16x8xf32>
    %c0_93 = arith.constant 0 : index
    %c0_94 = arith.constant 0 : index
    %325 = vector.load %arg10[%c0_93, %c0_94] : memref<16x8xf32, #tpu.memory_space<vmem>>, vector<16x8xf32>
    tpu.vector_store %arg10[%c0_93, %c0_94], %324 {strides = array<i32>} : memref<16x8xf32, #tpu.memory_space<vmem>>, vector<16x8xf32>,
    return
  }
}

</mosaic_0001>

<bundles_post_ra>
// kernel: tpu_custom_call.1
= control target key start
LH: loop header
LB: loop body
LE: loop exit
PB: predicated region body
PF: predicated region fallthrough
CT: control target
= control target key end

     0   :  { %vm58_vm0 = vcmask 64512   ;;  %v2576_v14 = vmov 0.0   ;;  %vm2577_vm1 = vmmov 0   ;;  %v2578_v16 = vmov 1   ;;  %s2587_s24 = smov 80   ;;  %s2588_s25 = smov 64   ;;  %s3191_s2 = inlined_call_operand.vmem [shape: f32[8,96], index: 2, kind: input, shape index: {}]   ;;  %s3192_s0 = inlined_call_operand.vmem [shape: f32[16,8], index: 0, kind: input, shape index: {}]   ;;  %s3193_s4 = inlined_call_operand.vmem [shape: f32[96,6], index: 4, kind: input, shape index: {}]   ;;  %s3194_s3 = inlined_call_operand.vmem [shape: f32[6,96], index: 3, kind: input, shape index: {}]   ;;  %s3195_s1 = inlined_call_operand.vmem [shape: f32[16,16], index: 1, kind: input, shape index: {}]   ;;  %s3196_s6 = inlined_call_operand.vmem [shape: f32[16,48], index: 6, kind: input, shape index: {}]   ;;  %s3197_s8 = inlined_call_operand.vmem [shape: f32[48,6], index: 8, kind: input, shape index: {}]   ;;  %s3198_s5 = inlined_call_operand.vmem [shape: f32[1,16], index: 5, kind: input, shape index: {}]   ;;  %s3199_s7 = inlined_call_operand.vmem [shape: f32[6,48], index: 7, kind: input, shape index: {}]   ;;  %s3200_s9 = inlined_call_operand.vmem [shape: f32[1,8], index: 9, kind: input, shape index: {}]   ;;  %s3201_s10 = inlined_call_operand.vmem [shape: f32[16,8], index: 10, kind: output, shape index: {}]  }
   0x1   :  { %v43_v0 = vld [vmem:[%s3191_s2] sm:$0xff]  ;;  %v42_v2 = vld [vmem:[%s3192_s0 + $0x8] sm:$0xff]  ;;  %v56_v3 = vld [vmem:[%s3193_s4 + $0x58] sm:$0xff]  ;;  %2452 = vset.pattern.permute.xlu0 %v2578_v16  ;;  %v2579_v17 = vmov 0   ;;  %vm140_vm2 = vcmask 785408   ;;  %v2580_v23 = vmov 2   ;;  %v305_v29 = vlaneseq }
   0x2   :  { %v41_v1 = vld [vmem:[%s3192_s0] sm:$0xff]  ;;  %2283 = vmatprep.subr.mxu0 %v43_v0  ;;  %v55_v4 = vld [vmem:[%s3193_s4 + $0x50] sm:$0xff]  ;;  %2288 = vmatprep.subr.mxu1 %v56_v3  ;;  %v54_v5 = vld [vmem:[%s3193_s4 + $0x48] sm:$0xff]  ;;  %v2581_v24 = vmov 3   ;;  %v2582_v27 = vmov 4   ;;  %v2583_v28 = vmov 5  }
   0x3   :  { %2285 = vmatprep.mubr.msk.f32.mxu0 %vm58_vm0, %v41_v1  ;;  %2284 = vmatpush3.msra.mxu0 %v43_v0  ;;  %v53_v6 = vld [vmem:[%s3193_s4 + $0x40] sm:$0xff]  ;;  %v52_v7 = vld [vmem:[%s3193_s4 + $0x38] sm:$0xff]  ;;  %v51_v8 = vld [vmem:[%s3193_s4 + $0x30] sm:$0xff]  ;;  %v2726_v30 = vshrl.u32 %v305_v29, 7  ;;  %v2584_v42 = vmov -1e+30  }
   0x4   :  { %2286 = vmatmul.mubr.msk.f32.vlgmr.msra.gmra.mxu0 %vm58_vm0, %v42_v2  ;;  %2289 = vmatpush3.msra.mxu1 %v56_v3  ;;  %v50_v9 = vld [vmem:[%s3193_s4 + $0x28] sm:$0xff]  ;;  %v49_v10 = vld [vmem:[%s3193_s4 + $0x20] sm:$0xff]  ;;  %v48_v11 = vld [vmem:[%s3193_s4 + $0x18] sm:$0xff]  ;;  %vm319_vm6 = vcmask 130048   ;;  %s2586_s0 = smov 96   ;;  %s2589_s26 = smov 48  }
   0x5   :  { %2290 = vmatprep.subr.mxu1 %v55_v4  ;;  %v47_v12 = vld [vmem:[%s3193_s4 + $0x10] sm:$0xff]  ;;  %v46_v13 = vld [vmem:[%s3193_s4 + $0x8] sm:$0xff]  ;;  %2315 = vmatprep.subr.mxu0 %v2576_v14  ;;  %v45_v15 = vld [vmem:[%s3193_s4] sm:$0xff]  ;;  %v307_v31 = vsub.s32 0, %v2726_v30  ;;  %v352_v32 = vsub.s32 1, %v2726_v30  ;;  %v564_v38 = vsub.s32 2, %v2726_v30 }
   0x6   :  { %2291 = vmatpush3.msra.mxu1 %v55_v4  ;;  %2319 = vmatprep.mubr.msk.f32.mxu0 %vm2577_vm1, %v2576_v14  ;;  %v44_v20 = vld [vmem:[%s3194_s3] sm:$0x3f]  ;;  %v36_v33 = vld [vmem:[%s3195_s1 + $0x8] sm:$0xff]  ;;  %v697_v41 = vsub.s32 3, %v2726_v30  ;;  %v830_v63 = vsub.s32 4, %v2726_v30  ;;  %s2591_s22 = smov 104  }
   0x7   :  { %2292 = vmatprep.subr.mxu1 %v54_v5  ;;  %2453 = vset.pattern.permute.xlu1 %v2579_v17  ;;  %vm38_vm3 = vcmp.gt.f32.partialorder %v36_v33, 0.0  ;;  %v35_v55 = vld [vmem:[%s3195_s1] sm:$0xff]  ;;  %s2585_s1 = smov 112   ;;  %s2592_s2 = smov 88  }
   0x8   :  { %2293 = vmatpush3.msra.mxu1 %v54_v5  ;;  %v2741_v43 = vsel %vm38_vm3, 0.0, %v2584_v42  ;;  %vm37_vm8 = vcmp.gt.f32.partialorder %v35_v55, 0.0 }
   0x9   :  { %2294 = vmatprep.subr.mxu1 %v53_v6  ;;  %v2766_v4 = vsel %vm37_vm8, 0.0, %v2584_v42 }
   0xa   :  { %2295 = vmatpush3.msra.mxu1 %v53_v6 }
   0xb   :  { %2296 = vmatprep.subr.mxu1 %v52_v7 }
   0xc   :  { %2297 = vmatpush3.msra.mxu1 %v52_v7 }
   0xd   :  { %2298 = vmatprep.subr.mxu1 %v51_v8 }
   0xe   :  { %2299 = vmatpush3.msra.mxu1 %v51_v8 }
   0xf   :  { %2300 = vmatprep.subr.mxu1 %v50_v9 }
  0x10   :  { %2301 = vmatpush3.msra.mxu1 %v50_v9 }
  0x11   :  { %2302 = vmatprep.subr.mxu1 %v49_v10 }
  0x12   :  { %2303 = vmatpush3.msra.mxu1 %v49_v10 }
  0x13   :  { %2304 = vmatprep.subr.mxu1 %v48_v11 }
  0x14   :  { %2305 = vmatpush3.msra.mxu1 %v48_v11 }
  0x15   :  { %2306 = vmatprep.subr.mxu1 %v47_v12 }
  0x16   :  { %2307 = vmatpush3.msra.mxu1 %v47_v12 }
  0x17   :  { %2308 = vmatprep.subr.mxu1 %v46_v13 }
  0x18   :  { %2309 = vmatpush3.msra.mxu1 %v46_v13  ;;  %v963_v13 = vsub.s32 5, %v2726_v30 }
  0x19   :  { %2310 = vmatprep.subr.mxu1 %v45_v15 }
  0x1a   :  { %2311 = vmatpush3.msra.mxu1 %v45_v15 }
  0xc4   :  { %v2700_v18 = vpop.f32.mrf.mxu0 }
  0xc5   :  { %2316 = vmatpush3.xpose.msk.msra.mxu0 %vm140_vm2, %v2700_v18 }
  0xc6   :  { %v2703_v19 = vpop.f32.mrf.mxu0  ;;  %2317 = vmatprep.subr.mxu0 %v2576_v14 }
  0xc7   :  { %2312 = vmatprep.mubr.msk.f32.mxu1 %vm140_vm2, %v2703_v19 }
  0xc8   :  { %2313 = vmatmul.mubr.msk.f32.vlgmr.msra.gmra.mxu1 %vm140_vm2, %v2700_v18 }
  0xc9   :  { %2318 = vmatpush3.xpose.msk.msra.mxu0 %vm140_vm2, %v2703_v19 }
  0xcc   :  { %2320 = vmatmul.mubr.msk.f32.vlgmr.msra.gmra.mxu0 %vm140_vm2, %v44_v20 }
 0x188   :  { %v2314_v21 = vpop.f32.mrf.mxu1 }
 0x189   :  { %302 = vperm.xlu1 %2453, %v2314_v21   ;;  %347 = vperm.xlu0 %2452, %v2314_v21  }
 0x18a   :  { %v213_v26 = vpop.f32.mrf.mxu1 }
 0x18c   :  { %v2712_v22 = vpop.f32.mrf.mxu0 }
 0x18d   :  { %2454 = vset.pattern.permute.xlu1 %v2580_v23  ;;  %2455 = vset.pattern.permute.xlu0 %v2581_v24  ;;  %v308_v34 = vrot.slane %v2712_v22, %v307_v31  ;;  %v353_v35 = vrot.slane %v2712_v22, %v352_v32  ;;  %v565_v46 = vrot.slane %v2712_v22, %v564_v38 }
 0x18e   :  { %559 = vperm.xlu1 %2454, %v2314_v21   ;;  %692 = vperm.xlu0 %2455, %v2314_v21   ;;  %v2321_v25 = vpop.f32.mrf.mxu0  ;;  %v698_v48 = vrot.slane %v2712_v22, %v697_v41  ;;  %v831_v8 = vrot.slane %v2712_v22, %v830_v63 }
 0x192   :  { %2457 = vset.pattern.permute.xlu1 %v2579_v17  ;;  %2456 = vset.pattern.permute.xlu0 %v2578_v16 }
 0x193   :  { %297 = vperm.xlu1 %2457, %v213_v26   ;;  %343 = vperm.xlu0 %2456, %v213_v26  }
 0x197   :  { %2458 = vset.pattern.permute.xlu1 %v2582_v27  ;;  %2459 = vset.pattern.permute.xlu0 %v2580_v23 }
 0x198   :  { %825 = vperm.xlu1 %2458, %v2314_v21   ;;  %555 = vperm.xlu0 %2459, %v213_v26  }
 0x19c   :  { %2460 = vset.pattern.permute.xlu1 %v2581_v24  ;;  %2462 = vset.pattern.permute.xlu0 %v2583_v28 }
 0x19d   :  { %688 = vperm.xlu1 %2460, %v213_v26   ;;  %954 = vperm.xlu0 %2462, %v213_v26  }
 0x1a1   :  { %2461 = vset.pattern.permute.xlu1 %v2582_v27  ;;  %2464 = vset.pattern.permute.xlu0 %v2578_v16 }
 0x1a2   :  { %821 = vperm.xlu1 %2461, %v213_v26  }
 0x1a6   :  { %2463 = vset.pattern.permute.xlu1 %v2583_v28 }
 0x1a7   :  { %958 = vperm.xlu1 %2463, %v2314_v21  }
 0x1ab   :  { %2465 = vset.pattern.permute.xlu1 %v2579_v17 }
 0x204   :  { %v303_v36 = vpop.permute.xlu1 %302  ;;  %v348_v37 = vpop.permute.xlu0 %347 }
 0x205   :  { %v310_v39 = vadd.f32 %v308_v34, %v303_v36  ;;  %v355_v40 = vadd.f32 %v353_v35, %v348_v37 }
 0x207   :  { %vm312_vm4 = vcmp.gt.f32.partialorder %v310_v39, 0.0  ;;  %v314_v44 = vmul.f32 0.2, %v310_v39  ;;  %vm357_vm5 = vcmp.gt.f32.partialorder %v355_v40, 0.0  ;;  %v359_v45 = vmul.f32 0.2, %v355_v40 }
 0x209   :  { %v560_v47 = vpop.permute.xlu1 %559  ;;  %v693_v49 = vpop.permute.xlu0 %692  ;;  %v316_v50 = vsel %vm312_vm4, %v310_v39, %v314_v44  ;;  %v361_v51 = vsel %vm357_vm5, %v355_v40, %v359_v45  ;;  %v964_v39 = vrot.slane %v2712_v22, %v963_v13 }
 0x20a   :  { %v567_v52 = vadd.f32 %v565_v46, %v560_v47  ;;  %v2750_v53 = vadd.f32 %v316_v50, %v2741_v43  ;;  %v2753_v54 = vadd.f32 %v361_v51, %v2741_v43  ;;  %v700_v56 = vadd.f32 %v698_v48, %v693_v49 }
 0x20c   :  { %vm569_vm7 = vcmp.gt.f32.partialorder %v567_v52, 0.0  ;;  %v571_v57 = vmul.f32 0.2, %v567_v52  ;;  %v323_v58 = vsel %vm319_vm6, %v2750_v53, -inf  ;;  %v367_v59 = vsel %vm319_vm6, %v2753_v54, -inf }
 0x20d   :  { %324 = vmax.xlane.f32.xlu1 %v323_v58  ;;  %368 = vmax.xlane.f32.xlu0 %v367_v59  ;;  %v704_v0 = vmul.f32 0.2, %v700_v56  ;;  %vm702_vm9 = vcmp.gt.f32.partialorder %v700_v56, 0.0 }
 0x20e   :  { %v298_v60 = vpop.permute.xlu1 %297  ;;  %v344_v61 = vpop.permute.xlu0 %343  ;;  %v573_v62 = vsel %vm569_vm7, %v567_v52, %v571_v57  ;;  %vm1197_vm7 = vcmask 392192  }
 0x20f   :  { %v309_v1 = vadd.f32 %v308_v34, %v298_v60  ;;  %v354_v2 = vadd.f32 %v353_v35, %v344_v61  ;;  %v2764_v3 = vadd.f32 %v573_v62, %v2741_v43  ;;  %v706_v15 = vsel %vm702_vm9, %v700_v56, %v704_v0 }
 0x210   :  { %v2785_v36 = vadd.f32 %v706_v15, %v2741_v43 }
 0x211   :  { %vm311_vm10 = vcmp.gt.f32.partialorder %v309_v1, 0.0  ;;  %v313_v5 = vmul.f32 0.2, %v309_v1  ;;  %vm356_vm11 = vcmp.gt.f32.partialorder %v354_v2, 0.0  ;;  %v358_v6 = vmul.f32 0.2, %v354_v2 }
 0x212   :  { %v579_v7 = vsel %vm319_vm6, %v2764_v3, -inf  ;;  %v712_v50 = vsel %vm319_vm6, %v2785_v36, -inf }
 0x213   :  { %580 = vmax.xlane.f32.xlu1 %v579_v7  ;;  %v826_v9 = vpop.permute.xlu1 %825  ;;  %v556_v10 = vpop.permute.xlu0 %555  ;;  %v315_v11 = vsel %vm311_vm10, %v309_v1, %v313_v5  ;;  %v360_v12 = vsel %vm356_vm11, %v354_v2, %v358_v6 }
 0x214   :  { %v833_v20 = vadd.f32 %v831_v8, %v826_v9  ;;  %v566_v21 = vadd.f32 %v565_v46, %v556_v10  ;;  %v2775_v25 = vadd.f32 %v315_v11, %v2766_v4  ;;  %v2778_v26 = vadd.f32 %v360_v12, %v2766_v4 }
 0x216   :  { %vm835_vm12 = vcmp.gt.f32.partialorder %v833_v20, 0.0  ;;  %v837_v29 = vmul.f32 0.2, %v833_v20  ;;  %vm568_vm13 = vcmp.gt.f32.partialorder %v566_v21, 0.0  ;;  %v570_v33 = vmul.f32 0.2, %v566_v21 }
 0x217   :  { %v320_v34 = vsel %vm319_vm6, %v2775_v25, -inf  ;;  %v364_v35 = vsel %vm319_vm6, %v2778_v26, -inf }
 0x218   :  { %321 = vmax.xlane.f32.xlu0 %v320_v34  ;;  %365 = vmax.xlane.f32.xlu1 %v364_v35  ;;  %v689_v37 = vpop.permute.xlu1 %688  ;;  %v955_v40 = vpop.permute.xlu0 %954  ;;  %v572_v42 = vsel %vm568_vm13, %v566_v21, %v570_v33  ;;  %v839_v44 = vsel %vm835_vm12, %v833_v20, %v837_v29 }
 0x219   :  { %v699_v45 = vadd.f32 %v698_v48, %v689_v37  ;;  %v2791_v46 = vadd.f32 %v572_v42, %v2766_v4  ;;  %v965_v47 = vadd.f32 %v964_v39, %v955_v40  ;;  %v2796_v51 = vadd.f32 %v839_v44, %v2741_v43 }
 0x21b   :  { %vm701_vm14 = vcmp.gt.f32.partialorder %v699_v45, 0.0  ;;  %v703_v49 = vmul.f32 0.2, %v699_v45  ;;  %v576_v22 = vsel %vm319_vm6, %v2791_v46, -inf  ;;  %v969_v48 = vmul.f32 0.2, %v965_v47 }
 0x21c   :  { %713 = vmax.xlane.f32.xlu1 %v712_v50  ;;  %577 = vmax.xlane.f32.xlu0 %v576_v22  ;;  %vm967_vm15 = vcmp.gt.f32.partialorder %v965_v47, 0.0  ;;  %v845_v58 = vsel %vm319_vm6, %v2796_v51, -inf }
 0x21d   :  { %v822_v52 = vpop.permute.xlu1 %821  ;;  %v705_v55 = vsel %vm701_vm14, %v699_v45, %v703_v49  ;;  %v971_v0 = vsel %vm967_vm15, %v965_v47, %v969_v48 }
 0x21e   :  { %v832_v56 = vadd.f32 %v831_v8, %v822_v52  ;;  %v2801_v57 = vadd.f32 %v705_v55, %v2766_v4  ;;  %v2813_v7 = vadd.f32 %v971_v0, %v2766_v4 }
 0x220   :  { %vm834_vm2 = vcmp.gt.f32.partialorder %v832_v56, 0.0  ;;  %v836_v59 = vmul.f32 0.2, %v832_v56  ;;  %846 = vmax.xlane.f32.xlu1 %v845_v58  ;;  %v709_v60 = vsel %vm319_vm6, %v2801_v57, -inf  ;;  %v975_v10 = vsel %vm319_vm6, %v2813_v7, -inf }
 0x221   :  { %710 = vmax.xlane.f32.xlu0 %v709_v60 }
 0x222   :  { %v959_v61 = vpop.permute.xlu1 %958  ;;  %v838_v62 = vsel %vm834_vm2, %v832_v56, %v836_v59 }
 0x223   :  { %v966_v1 = vadd.f32 %v964_v39, %v959_v61  ;;  %v2808_v2 = vadd.f32 %v838_v62, %v2766_v4 }
 0x225   :  { %vm968_vm3 = vcmp.gt.f32.partialorder %v966_v1, 0.0  ;;  %v970_v5 = vmul.f32 0.2, %v966_v1  ;;  %v842_v6 = vsel %vm319_vm6, %v2808_v2, -inf }
 0x226   :  { %843 = vmax.xlane.f32.xlu0 %v842_v6 }
 0x227   :  { %v972_v8 = vsel %vm968_vm3, %v966_v1, %v970_v5 }
 0x228   :  { %v2816_v9 = vadd.f32 %v972_v8, %v2741_v43 }
 0x22a   :  { %976 = vmax.xlane.f32.xlu0 %v975_v10  ;;  %v978_v11 = vsel %vm319_vm6, %v2816_v9, -inf }
 0x22b   :  { %979 = vmax.xlane.f32.xlu1 %v978_v11 }
 0x23c   :  { %386 = vrot.lane.b32.xlu1 %v2703_v19, %s2585_s1 }
 0x240   :  { %600 = vrot.lane.b32.xlu1 %v2700_v18, %s2586_s0  ;;  %388 = vrot.lane.b32.xlu0 %v2700_v18, %s2585_s1 }
 0x244   :  { %733 = vrot.lane.b32.xlu1 %v2700_v18, %s2587_s24  ;;  %598 = vrot.lane.b32.xlu0 %v2703_v19, %s2586_s0 }
 0x248   :  { %866 = vrot.lane.b32.xlu1 %v2700_v18, %s2588_s25  ;;  %731 = vrot.lane.b32.xlu0 %v2703_v19, %s2587_s24 }
 0x24c   :  { %864 = vrot.lane.b32.xlu0 %v2703_v19, %s2588_s25 }
 0x296   :  { %v325_v12 = vpop.xlane.xlu1 %324  ;;  %v369_v15 = vpop.xlane.xlu0 %368 }
 0x297   :  { %v327_v20 = vsub.f32 %v2750_v53, %v325_v12  ;;  %v371_v21 = vsub.f32 %v2753_v54, %v369_v15 }
 0x299   :  { %v374_v29 = vmul.f32 1.442695, %v371_v21  ;;  %v330_v33 = vmul.f32 1.442695, %v327_v20 }
 0x29b   :  { %2476 = vpow2.f32 %v374_v29 }
 0x29c   :  { %v581_v34 = vpop.xlane.xlu1 %580  ;;  %2478 = vpow2.f32 %v330_v33 }
 0x29d   :  { %v583_v35 = vsub.f32 %v2764_v3, %v581_v34 }
 0x29f   :  { %v586_v37 = vmul.f32 1.442695, %v583_v35 }
 0x2a1   :  { %v366_v39 = vpop.xlane.xlu1 %365  ;;  %v322_v40 = vpop.xlane.xlu0 %321  ;;  %2480 = vpow2.f32 %v586_v37 }
 0x2a2   :  { %v370_v42 = vsub.f32 %v2778_v26, %v366_v39  ;;  %v326_v44 = vsub.f32 %v2775_v25, %v322_v40 }
 0x2a4   :  { %v372_v45 = vmul.f32 1.442695, %v370_v42  ;;  %v328_v47 = vmul.f32 1.442695, %v326_v44 }
 0x2a5   :  { %v714_v53 = vpop.xlane.xlu1 %713  ;;  %v578_v49 = vpop.xlane.xlu0 %577 }
 0x2a6   :  { %2482 = vpow2.f32 %v372_v45  ;;  %v716_v54 = vsub.f32 %v2785_v36, %v714_v53  ;;  %v582_v50 = vsub.f32 %v2791_v46, %v578_v49 }
 0x2a7   :  { %2484 = vpow2.f32 %v328_v47 }
 0x2a8   :  { %v719_v3 = vmul.f32 1.442695, %v716_v54  ;;  %v584_v22 = vmul.f32 1.442695, %v582_v50  ;;  %v2841_v55 = vpop.eup %2476 }
 0x2a9   :  { %v847_v52 = vpop.xlane.xlu1 %846  ;;  %v379_v48 = vsel %vm319_vm6, %v2841_v55, 0.0  ;;  %v2847_v58 = vpop.eup %2478 }
 0x2aa   :  { %2486 = vpow2.f32 %v719_v3  ;;  %v849_v26 = vsub.f32 %v2796_v51, %v847_v52  ;;  %v711_v25 = vpop.xlane.xlu0 %710  ;;  %380 = vadd.xlane.f32.xlu1 %v379_v48  ;;  %v335_v59 = vsel %vm319_vm6, %v2847_v58, 0.0 }
 0x2ab   :  { %v715_v56 = vsub.f32 %v2801_v57, %v711_v25  ;;  %2488 = vpow2.f32 %v584_v22 }
 0x2ac   :  { %v852_v36 = vmul.f32 1.442695, %v849_v26 }
 0x2ad   :  { %v717_v46 = vmul.f32 1.442695, %v715_v56 }
 0x2ae   :  { %2490 = vpow2.f32 %v852_v36  ;;  %v2851_v61 = vpop.eup %2480  ;;  %336 = vadd.xlane.f32.xlu1 %v335_v59 }
 0x2af   :  { %v844_v60 = vpop.xlane.xlu0 %843  ;;  %2492 = vpow2.f32 %v717_v46  ;;  %v591_v57 = vsel %vm319_vm6, %v2851_v61, 0.0 }
 0x2b0   :  { %v848_v51 = vsub.f32 %v2808_v2, %v844_v60 }
 0x2b2   :  { %v850_v62 = vmul.f32 1.442695, %v848_v51  ;;  %592 = vadd.xlane.f32.xlu1 %v591_v57 }
 0x2b3   :  { %v2854_v0 = vpop.eup %2482  ;;  %v977_v1 = vpop.xlane.xlu0 %976 }
 0x2b4   :  { %2494 = vpow2.f32 %v850_v62  ;;  %v981_v5 = vsub.f32 %v2813_v7, %v977_v1  ;;  %v980_v6 = vpop.xlane.xlu1 %979  ;;  %v376_v8 = vsel %vm319_vm6, %v2854_v0, 0.0  ;;  %v2861_v10 = vpop.eup %2484 }
 0x2b5   :  { %v982_v11 = vsub.f32 %v2816_v9, %v980_v6  ;;  %377 = vadd.xlane.f32.xlu0 %v376_v8  ;;  %v332_v7 = vsel %vm319_vm6, %v2861_v10, 0.0 }
 0x2b6   :  { %v983_v2 = vmul.f32 1.442695, %v981_v5 }
 0x2b7   :  { %v2864_v12 = vpop.eup %2486  ;;  %v985_v15 = vmul.f32 1.442695, %v982_v11  ;;  %v389_v20 = vpop.permute.xlu0 %388 }
 0x2b8   :  { %2496 = vpow2.f32 %v983_v2  ;;  %v387_v21 = vpop.permute.xlu1 %386  ;;  %v724_v29 = vsel %vm319_vm6, %v2864_v12, 0.0  ;;  %2322 = vmatprep.subr.mxu0 %v389_v20  ;;  %v2870_v33 = vpop.eup %2488 }
 0x2b9   :  { %2498 = vpow2.f32 %v985_v15  ;;  %725 = vadd.xlane.f32.xlu1 %v724_v29  ;;  %333 = vadd.xlane.f32.xlu0 %v332_v7  ;;  %v588_v39 = vsel %vm319_vm6, %v2870_v33, 0.0 }
 0x2ba   :  { %2323 = vmatpush3.msra.mxu0 %v389_v20 }
 0x2bb   :  { %v2872_v9 = vpop.eup %2490  ;;  %2324 = vmatprep.subr.mxu0 %v387_v21  ;;  %v2874_v34 = vpop.permute.xlu0 %598 }
 0x2bc   :  { %2325 = vmatpush3.msra.mxu0 %v387_v21  ;;  %v2876_v35 = vpop.permute.xlu1 %600  ;;  %v857_v37 = vsel %vm319_vm6, %v2872_v9, 0.0  ;;  %v2882_v40 = vpop.eup %2492 }
 0x2bd   :  { %858 = vadd.xlane.f32.xlu1 %v857_v37  ;;  %589 = vadd.xlane.f32.xlu0 %v588_v39  ;;  %v721_v45 = vsel %vm319_vm6, %v2882_v40, 0.0 }
 0x2be   :  { %2329 = vmatprep.subr.mxu0 %v2700_v18 }
 0x2bf   :  { %v2885_v42 = vpop.permute.xlu0 %731 }
 0x2c0   :  { %v2887_v44 = vpop.permute.xlu1 %733 }
 0x2c1   :  { %v2891_v47 = vpop.eup %2494  ;;  %722 = vadd.xlane.f32.xlu0 %v721_v45  ;;  %v1106_v45 = vld [vmem:[%s3196_s6] sm:$0xff] }
 0x2c2   :  { %v854_v53 = vsel %vm319_vm6, %v2891_v47, 0.0 }
 0x2c3   :  { %v865_v3 = vpop.permute.xlu0 %864 }
 0x2c4   :  { %v867_v54 = vpop.permute.xlu1 %866 }
 0x2c5   :  { %v2895_v49 = vpop.eup %2496  ;;  %855 = vadd.xlane.f32.xlu0 %v854_v53  ;;  %2350 = vmatprep.subr.mxu1 %v867_v54  ;;  %v1113_v53 = vld [vmem:[%s3197_s8 + $0x20] sm:$0xff] }
 0x2c6   :  { %v2897_v50 = vpop.eup %2498  ;;  %2351 = vmatpush3.msra.mxu1 %v867_v54  ;;  %v987_v22 = vsel %vm319_vm6, %v2895_v49, 0.0  ;;  %v1112_v54 = vld [vmem:[%s3197_s8 + $0x18] sm:$0xff] }
 0x2c7   :  { %2352 = vmatprep.subr.mxu1 %v865_v3  ;;  %v990_v52 = vsel %vm319_vm6, %v2897_v50, 0.0 }
 0x2c8   :  { %991 = vadd.xlane.f32.xlu1 %v990_v52  ;;  %2353 = vmatpush3.msra.mxu1 %v865_v3  ;;  %v1109_v3 = vld [vmem:[%s3197_s8] sm:$0xff] }
 0x2c9   :  { %988 = vadd.xlane.f32.xlu0 %v987_v22 }
 0x2d9   :  { %999 = vrot.lane.b32.xlu1 %v2700_v18, %s2589_s26 }
 0x2df   :  { %997 = vrot.lane.b32.xlu0 %v2703_v19, %s2589_s26 }
 0x333   :  { %v381_v26 = vpop.xlane.xlu1 %380 }
 0x334   :  { %2500 = vrcp.f32 %v381_v26 }
 0x337   :  { %v337_v25 = vpop.xlane.xlu1 %336 }
 0x33b   :  { %v593_v56 = vpop.xlane.xlu1 %592 }
 0x33e   :  { %v378_v48 = vpop.xlane.xlu0 %377 }
 0x33f   :  { %2502 = vrcp.f32 %v378_v48 }
 0x340   :  { %2504 = vrcp.f32 %v337_v25 }
 0x341   :  { %v2501_v51 = vpop.eup %2500 }
 0x342   :  { %v334_v36 = vpop.xlane.xlu0 %333  ;;  %v726_v46 = vpop.xlane.xlu1 %725  ;;  %v385_v6 = vmul.f32 %v2501_v51, %v2841_v55 }
 0x343   :  { %2506 = vrcp.f32 %v334_v36 }
 0x344   :  { %2508 = vrcp.f32 %v593_v56 }
 0x346   :  { %v590_v59 = vpop.xlane.xlu0 %589  ;;  %v859_v62 = vpop.xlane.xlu1 %858 }
 0x347   :  { %2510 = vrcp.f32 %v590_v59 }
 0x348   :  { %2512 = vrcp.f32 %v726_v46 }
 0x34a   :  { %v723_v60 = vpop.xlane.xlu0 %722 }
 0x34b   :  { %2514 = vrcp.f32 %v723_v60 }
 0x34c   :  { %v2503_v57 = vpop.eup %2502  ;;  %2516 = vrcp.f32 %v859_v62 }
 0x34d   :  { %v384_v1 = vmul.f32 %v2503_v57, %v2854_v0  ;;  %v2505_v8 = vpop.eup %2504 }
 0x34e   :  { %v856_v5 = vpop.xlane.xlu0 %855  ;;  %v341_v55 = vmul.f32 %v2505_v8, %v2847_v58 }
 0x34f   :  { %2518 = vrcp.f32 %v856_v5  ;;  %2326 = vmatprep.mubr.msk.f32.mxu0 %vm319_vm6, %v384_v1 }
 0x350   :  { %2327 = vmatmul.mubr.msk.f32.vlgmr.msra.gmra.mxu0 %vm319_vm6, %v385_v6  ;;  %v2507_v11 = vpop.eup %2506 }
 0x351   :  { %2330 = vmatpush3.msra.mxu0 %v2700_v18  ;;  %v992_v2 = vpop.xlane.xlu1 %991  ;;  %v340_v0 = vmul.f32 %v2507_v11, %v2861_v10  ;;  %v2509_v20 = vpop.eup %2508 }
 0x352   :  { %2331 = vmatprep.subr.mxu0 %v2703_v19  ;;  %2520 = vrcp.f32 %v992_v2  ;;  %v989_v15 = vpop.xlane.xlu0 %988 }
 0x353   :  { %2332 = vmatpush3.msra.mxu0 %v2703_v19  ;;  %2522 = vrcp.f32 %v989_v15  ;;  %2333 = vmatprep.mubr.msk.f32.mxu0 %vm319_vm6, %v340_v0  ;;  %v597_v19 = vmul.f32 %v2509_v20, %v2851_v61  ;;  %v2177_v0 = vld [vmem:[%s3198_s5] ss:$0 sm:$0xff] }
 0x354   :  { %2336 = vmatprep.subr.mxu0 %v2876_v35  ;;  %v2511_v21 = vpop.eup %2510  ;;  %2334 = vmatmul.mubr.msk.f32.vlgmr.msra.gmra.mxu0 %vm319_vm6, %v341_v55 }
 0x355   :  { %2337 = vmatpush3.msra.mxu0 %v2876_v35  ;;  %v596_v18 = vmul.f32 %v2511_v21, %v2870_v33  ;;  %v2513_v29 = vpop.eup %2512  ;;  %v1000_v35 = vpop.permute.xlu1 %999 }
 0x356   :  { %2338 = vmatprep.subr.mxu0 %v2874_v34  ;;  %v730_v61 = vmul.f32 %v2513_v29, %v2864_v12  ;;  %v998_v37 = vpop.permute.xlu0 %997 }
 0x357   :  { %2339 = vmatpush3.msra.mxu0 %v2874_v34  ;;  %2340 = vmatprep.mubr.msk.f32.mxu0 %vm319_vm6, %v596_v18 }
 0x358   :  { %v2515_v10 = vpop.eup %2514  ;;  %2343 = vmatprep.subr.mxu0 %v2887_v44  ;;  %2341 = vmatmul.mubr.msk.f32.vlgmr.msra.gmra.mxu0 %vm319_vm6, %v597_v19 }
 0x359   :  { %v729_v58 = vmul.f32 %v2515_v10, %v2882_v40  ;;  %2344 = vmatpush3.msra.mxu0 %v2887_v44  ;;  %v2517_v7 = vpop.eup %2516 }
 0x35a   :  { %2345 = vmatprep.subr.mxu0 %v2885_v42  ;;  %v863_v39 = vmul.f32 %v2517_v7, %v2872_v9  ;;  %v1107_v9 = vld [vmem:[%s3196_s6 + $0x8] sm:$0xff] }
 0x35b   :  { %2347 = vmatprep.mubr.msk.f32.mxu0 %vm319_vm6, %v729_v58  ;;  %2346 = vmatpush3.msra.mxu0 %v2885_v42 }
 0x35c   :  { %v2519_v33 = vpop.eup %2518  ;;  %2357 = vmatprep.subr.mxu0 %v1000_v35  ;;  %2348 = vmatmul.mubr.msk.f32.vlgmr.msra.gmra.mxu0 %vm319_vm6, %v730_v61 }
 0x35d   :  { %v862_v34 = vmul.f32 %v2519_v33, %v2891_v47  ;;  %2358 = vmatpush3.msra.mxu0 %v1000_v35  ;;  %2364 = vmatprep.subr.mxu1 %v1107_v9  ;;  %v1114_v47 = vld [vmem:[%s3197_s8 + $0x28] sm:$0xff] }
 0x35e   :  { %2359 = vmatprep.subr.mxu0 %v998_v37 }
 0x35f   :  { %v2521_v40 = vpop.eup %2520  ;;  %2354 = vmatprep.mubr.msk.f32.mxu1 %vm319_vm6, %v862_v34  ;;  %2360 = vmatpush3.msra.mxu0 %v998_v37 }
 0x360   :  { %v2523_v44 = vpop.eup %2522  ;;  %2355 = vmatmul.mubr.msk.f32.vlgmr.msra.gmra.mxu1 %vm319_vm6, %v863_v39  ;;  %v996_v12 = vmul.f32 %v2521_v40, %v2897_v50  ;;  %2371 = vmatprep.subr.mxu0 %v1114_v47  ;;  %v1110_v50 = vld [vmem:[%s3197_s8 + $0x8] sm:$0xff] }
 0x361   :  { %v995_v42 = vmul.f32 %v2523_v44, %v2895_v49  ;;  %2365 = vmatpush3.msra.mxu1 %v1107_v9  ;;  %v1111_v49 = vld [vmem:[%s3197_s8 + $0x10] sm:$0xff]  ;;  %v1108_v44 = vld [vmem:[%s3199_s7] sm:$0x3f]  ;;  %s2590_s7 = smov 120  }
 0x362   :  { %2366 = vmatprep.subr.mxu1 %v1106_v45 }
 0x363   :  { %2361 = vmatprep.mubr.msk.f32.mxu0 %vm319_vm6, %v995_v42  ;;  %2367 = vmatpush3.msra.mxu1 %v1106_v45 }
 0x364   :  { %2362 = vmatmul.mubr.msk.f32.vlgmr.msra.gmra.mxu0 %vm319_vm6, %v996_v12  ;;  %2386 = vmatprep.subr.mxu1 %v2576_v14 }
 0x365   :  { %2372 = vmatpush3.msra.mxu0 %v1114_v47 }
 0x366   :  { %2373 = vmatprep.subr.mxu0 %v1113_v53 }
 0x367   :  { %2374 = vmatpush3.msra.mxu0 %v1113_v53 }
 0x368   :  { %2375 = vmatprep.subr.mxu0 %v1112_v54 }
 0x369   :  { %2376 = vmatpush3.msra.mxu0 %v1112_v54 }
 0x36a   :  { %2377 = vmatprep.subr.mxu0 %v1111_v49 }
 0x36b   :  { %2378 = vmatpush3.msra.mxu0 %v1111_v49 }
 0x36c   :  { %2379 = vmatprep.subr.mxu0 %v1110_v50 }
 0x36d   :  { %2380 = vmatpush3.msra.mxu0 %v1110_v50 }
 0x36e   :  { %2381 = vmatprep.subr.mxu0 %v1109_v3 }
 0x36f   :  { %2382 = vmatpush3.msra.mxu0 %v1109_v3 }
 0x410   :  { %v2328_v22 = vpop.f32.mrf.mxu0 }
 0x412   :  { %v464_v52 = vpop.f32.mrf.mxu0 }
 0x414   :  { %v2335_v26 = vpop.f32.mrf.mxu0 }
 0x415   :  { %v551_v36 = vadd.f32 %v2335_v26, %v2328_v22 }
 0x416   :  { %v545_v25 = vpop.f32.mrf.mxu0 }
 0x417   :  { %v546_v59 = vadd.f32 %v545_v25, %v464_v52 }
 0x418   :  { %v2342_v48 = vpop.f32.mrf.mxu0 }
 0x419   :  { %v686_v60 = vadd.f32 %v2342_v48, %v551_v36 }
 0x41a   :  { %v676_v56 = vpop.f32.mrf.mxu0 }
 0x41b   :  { %v685_v57 = vadd.f32 %v676_v56, %v546_v59 }
 0x41c   :  { %v2349_v46 = vpop.f32.mrf.mxu0 }
 0x41d   :  { %v819_v1 = vadd.f32 %v2349_v46, %v686_v60 }
 0x41e   :  { %v809_v51 = vpop.f32.mrf.mxu0 }
 0x41f   :  { %v818_v6 = vadd.f32 %v809_v51, %v685_v57 }
 0x420   :  { %v2356_v62 = vpop.f32.mrf.mxu1 }
 0x421   :  { %v952_v8 = vadd.f32 %v2356_v62, %v819_v1 }
 0x422   :  { %v942_v5 = vpop.f32.mrf.mxu1 }
 0x423   :  { %v951_v2 = vadd.f32 %v942_v5, %v818_v6 }
 0x424   :  { %v2363_v11 = vpop.f32.mrf.mxu0 }
 0x425   :  { %v1085_v15 = vadd.f32 %v2363_v11, %v952_v8 }
 0x426   :  { %v1075_v55 = vpop.f32.mrf.mxu0 }
 0x427   :  { %v1087_v20 = vmul.f32 0.16666667, %v1085_v15  ;;  %v1084_v21 = vadd.f32 %v1075_v55, %v951_v2 }
 0x429   :  { %v1095_v18 = vadd.f32 %v2177_v0, %v1087_v20  ;;  %v1086_v29 = vmul.f32 0.16666667, %v1084_v21 }
 0x42b   :  { %v1100_v19 = vmul.f32 1.442695, %v1095_v18  ;;  %v1094_v10 = vadd.f32 %v2177_v0, %v1086_v29  ;;  %vm1097_vm5 = vcmp.gt.f32.partialorder %v1095_v18, 0.0 }
 0x42d   :  { %2524 = vpow2.f32 %v1100_v19  ;;  %v1098_v58 = vmul.f32 1.442695, %v1094_v10  ;;  %vm1096_vm4 = vcmp.gt.f32.partialorder %v1094_v10, 0.0 }
 0x42f   :  { %2526 = vpow2.f32 %v1098_v58 }
 0x43a   :  { %v2525_v7 = vpop.eup %2524 }
 0x43b   :  { %v2179_v33 = vadd.f32 -1.0, %v2525_v7 }
 0x43c   :  { %v2527_v61 = vpop.eup %2526 }
 0x43d   :  { %v2178_v35 = vadd.f32 -1.0, %v2527_v61  ;;  %v1105_v37 = vsel %vm1097_vm5, %v1095_v18, %v2179_v33 }
 0x43f   :  { %v1104_v34 = vsel %vm1096_vm4, %v1094_v10, %v2178_v35 }
 0x440   :  { %2368 = vmatprep.mubr.msk.f32.mxu1 %vm319_vm6, %v1104_v34 }
 0x441   :  { %2369 = vmatmul.mubr.msk.f32.vlgmr.msra.gmra.mxu1 %vm319_vm6, %v1105_v37 }
 0x442   :  { %2390 = vmatprep.mubr.msk.f32.mxu1 %vm2577_vm1, %v2576_v14 }
 0x501   :  { %v2972_v39 = vpop.f32.mrf.mxu1 }
 0x502   :  { %2387 = vmatpush3.xpose.msk.msra.mxu1 %vm1197_vm7, %v2972_v39  ;;  %2400 = vmatprep.subr.mxu0 %v2972_v39 }
 0x503   :  { %v2976_v40 = vpop.f32.mrf.mxu1  ;;  %2388 = vmatprep.subr.mxu1 %v2576_v14 }
 0x504   :  { %2383 = vmatprep.mubr.msk.f32.mxu0 %vm1197_vm7, %v2976_v40 }
 0x505   :  { %2384 = vmatmul.mubr.msk.f32.vlgmr.msra.gmra.mxu0 %vm1197_vm7, %v2972_v39 }
 0x506   :  { %2401 = vmatpush3.msra.mxu0 %v2972_v39  ;;  %2389 = vmatpush3.xpose.msk.msra.mxu1 %vm1197_vm7, %v2976_v40 }
 0x507   :  { %2402 = vmatprep.subr.mxu0 %v2976_v40 }
 0x508   :  { %2403 = vmatpush3.msra.mxu0 %v2976_v40 }
 0x509   :  { %2391 = vmatmul.mubr.msk.f32.vlgmr.msra.gmra.mxu1 %vm1197_vm7, %v1108_v44 }
 0x5c5   :  { %v2385_v12 = vpop.f32.mrf.mxu0 }
 0x5c6   :  { %1359 = vperm.xlu1 %2465, %v2385_v12   ;;  %1403 = vperm.xlu0 %2464, %v2385_v12  }
 0x5c7   :  { %v1270_v9 = vpop.f32.mrf.mxu0 }
 0x5c9   :  { %v2988_v14 = vpop.f32.mrf.mxu1 }
 0x5ca   :  { %2466 = vset.pattern.permute.xlu1 %v2580_v23  ;;  %2467 = vset.pattern.permute.xlu0 %v2581_v24  ;;  %v1887_v56 = vrot.slane %v2988_v14, %v830_v63  ;;  %v2020_v44 = vrot.slane %v2988_v14, %v963_v13 }
 0x5cb   :  { %1615 = vperm.xlu1 %2466, %v2385_v12   ;;  %1748 = vperm.xlu0 %2467, %v2385_v12   ;;  %v2392_v42 = vpop.f32.mrf.mxu1 }
 0x5cf   :  { %2468 = vset.pattern.permute.xlu1 %v2582_v27  ;;  %2471 = vset.pattern.permute.xlu0 %v2580_v23  ;;  %v1409_v23 = vrot.slane %v2988_v14, %v352_v32 }
 0x5d0   :  { %1881 = vperm.xlu1 %2468, %v2385_v12   ;;  %1611 = vperm.xlu0 %2471, %v1270_v9  }
 0x5d4   :  { %2469 = vset.pattern.permute.xlu1 %v2578_v16  ;;  %2474 = vset.pattern.permute.xlu0 %v2583_v28  ;;  %v1365_v16 = vrot.slane %v2988_v14, %v307_v31 }
 0x5d5   :  { %2010 = vperm.xlu0 %2474, %v1270_v9   ;;  %1399 = vperm.xlu1 %2469, %v1270_v9  }
 0x5d9   :  { %2470 = vset.pattern.permute.xlu1 %v2579_v17 }
 0x5da   :  { %1354 = vperm.xlu1 %2470, %v1270_v9  }
 0x5de   :  { %2472 = vset.pattern.permute.xlu1 %v2581_v24  ;;  %v1621_v24 = vrot.slane %v2988_v14, %v564_v38 }
 0x5df   :  { %1744 = vperm.xlu1 %2472, %v1270_v9  }
 0x5e3   :  { %2473 = vset.pattern.permute.xlu1 %v2582_v27  ;;  %v1754_v27 = vrot.slane %v2988_v14, %v697_v41 }
 0x5e4   :  { %1877 = vperm.xlu1 %2473, %v1270_v9  }
 0x5e8   :  { %2475 = vset.pattern.permute.xlu1 %v2583_v28 }
 0x5e9   :  { %2014 = vperm.xlu1 %2475, %v2385_v12  }
 0x641   :  { %v1360_v45 = vpop.permute.xlu1 %1359  ;;  %v1404_v17 = vpop.permute.xlu0 %1403 }
 0x642   :  { %v1367_v47 = vadd.f32 %v1365_v16, %v1360_v45  ;;  %v1411_v53 = vadd.f32 %v1409_v23, %v1404_v17 }
 0x644   :  { %vm1369_vm1 = vcmp.gt.f32.partialorder %v1367_v47, 0.0  ;;  %v1371_v28 = vmul.f32 0.2, %v1367_v47  ;;  %vm1413_vm8 = vcmp.gt.f32.partialorder %v1411_v53, 0.0  ;;  %v1415_v31 = vmul.f32 0.2, %v1411_v53 }
 0x646   :  { %v1616_v54 = vpop.permute.xlu1 %1615  ;;  %v1749_v49 = vpop.permute.xlu0 %1748  ;;  %v1417_v50 = vsel %vm1413_vm8, %v1411_v53, %v1415_v31  ;;  %v1373_v32 = vsel %vm1369_vm1, %v1367_v47, %v1371_v28 }
 0x647   :  { %v1623_v3 = vadd.f32 %v1621_v24, %v1616_v54  ;;  %v1756_v22 = vadd.f32 %v1754_v27, %v1749_v49  ;;  %v3013_v52 = vadd.f32 %v1417_v50, %v2741_v43  ;;  %v3016_v26 = vadd.f32 %v1373_v32, %v2741_v43 }
 0x649   :  { %vm1625_vm9 = vcmp.gt.f32.partialorder %v1623_v3, 0.0  ;;  %v1627_v38 = vmul.f32 0.2, %v1623_v3  ;;  %vm1758_vm10 = vcmp.gt.f32.partialorder %v1756_v22, 0.0  ;;  %v1760_v41 = vmul.f32 0.2, %v1756_v22 }
 0x64a   :  { %v1423_v25 = vsel %vm319_vm6, %v3013_v52, -inf  ;;  %v1379_v48 = vsel %vm319_vm6, %v3016_v26, -inf }
 0x64b   :  { %1424 = vmax.xlane.f32.xlu0 %v1423_v25  ;;  %1380 = vmax.xlane.f32.xlu1 %v1379_v48  ;;  %v1882_v36 = vpop.permute.xlu1 %1881  ;;  %v1629_v46 = vsel %vm1625_vm9, %v1623_v3, %v1627_v38  ;;  %v1762_v51 = vsel %vm1758_vm10, %v1756_v22, %v1760_v41  ;;  %v1612_v57 = vpop.permute.xlu0 %1611 }
 0x64c   :  { %v1889_v59 = vadd.f32 %v1887_v56, %v1882_v36  ;;  %v3026_v60 = vadd.f32 %v1629_v46, %v2741_v43  ;;  %v3031_v5 = vadd.f32 %v1762_v51, %v2741_v43  ;;  %v1622_v11 = vadd.f32 %v1621_v24, %v1612_v57 }
 0x64e   :  { %vm1891_vm11 = vcmp.gt.f32.partialorder %v1889_v59, 0.0  ;;  %v1893_v62 = vmul.f32 0.2, %v1889_v59  ;;  %v1635_v1 = vsel %vm319_vm6, %v3026_v60, -inf  ;;  %v1768_v15 = vsel %vm319_vm6, %v3031_v5, -inf }
 0x64f   :  { %1636 = vmax.xlane.f32.xlu1 %v1635_v1  ;;  %v1626_v21 = vmul.f32 0.2, %v1622_v11  ;;  %vm1624_vm13 = vcmp.gt.f32.partialorder %v1622_v11, 0.0 }
 0x650   :  { %v1400_v63 = vpop.permute.xlu1 %1399  ;;  %v1895_v6 = vsel %vm1891_vm11, %v1889_v59, %v1893_v62  ;;  %v2011_v33 = vpop.permute.xlu0 %2010 }
 0x651   :  { %v1410_v8 = vadd.f32 %v1409_v23, %v1400_v63  ;;  %v3036_v0 = vadd.f32 %v1895_v6, %v2741_v43  ;;  %v1628_v61 = vsel %vm1624_vm13, %v1622_v11, %v1626_v21 }
 0x652   :  { %v3054_v9 = vadd.f32 %v1628_v61, %v2766_v4 }
 0x653   :  { %vm1412_vm12 = vcmp.gt.f32.partialorder %v1410_v8, 0.0  ;;  %v1414_v2 = vmul.f32 0.2, %v1410_v8  ;;  %1769 = vmax.xlane.f32.xlu1 %v1768_v15  ;;  %v1901_v29 = vsel %vm319_vm6, %v3036_v0, -inf }
 0x654   :  { %v1632_v47 = vsel %vm319_vm6, %v3054_v9, -inf }
 0x655   :  { %v1355_v55 = vpop.permute.xlu1 %1354  ;;  %v1416_v20 = vsel %vm1412_vm12, %v1410_v8, %v1414_v2 }
 0x656   :  { %v1366_v18 = vadd.f32 %v1365_v16, %v1355_v55  ;;  %v3041_v19 = vadd.f32 %v1416_v20, %v2766_v4  ;;  %v2021_v16 = vadd.f32 %v2020_v44, %v2011_v33 }
 0x657   :  { %1902 = vmax.xlane.f32.xlu1 %v1901_v29 }
 0x658   :  { %vm1368_vm14 = vcmp.gt.f32.partialorder %v1366_v18, 0.0  ;;  %v1370_v10 = vmul.f32 0.2, %v1366_v18  ;;  %v1420_v34 = vsel %vm319_vm6, %v3041_v19, -inf  ;;  %v2025_v13 = vmul.f32 0.2, %v2021_v16 }
 0x659   :  { %vm2023_vm3 = vcmp.gt.f32.partialorder %v2021_v16, 0.0 }
 0x65a   :  { %v1745_v58 = vpop.permute.xlu1 %1744  ;;  %v1372_v7 = vsel %vm1368_vm14, %v1366_v18, %v1370_v10  ;;  %v2027_v54 = vsel %vm2023_vm3, %v2021_v16, %v2025_v13 }
 0x65b   :  { %v1755_v35 = vadd.f32 %v1754_v27, %v1745_v58  ;;  %v3046_v37 = vadd.f32 %v1372_v7, %v2766_v4  ;;  %1421 = vmax.xlane.f32.xlu1 %v1420_v34  ;;  %v3069_v3 = vadd.f32 %v2027_v54, %v2766_v4 }
 0x65d   :  { %vm1757_vm15 = vcmp.gt.f32.partialorder %v1755_v35, 0.0  ;;  %v1759_v12 = vmul.f32 0.2, %v1755_v35  ;;  %v1376_v42 = vsel %vm319_vm6, %v3046_v37, -inf  ;;  %v2031_v41 = vsel %vm319_vm6, %v3069_v3, -inf }
 0x65e   :  { %1377 = vmax.xlane.f32.xlu0 %v1376_v42 }
 0x65f   :  { %v1878_v23 = vpop.permute.xlu1 %1877  ;;  %v1761_v45 = vsel %vm1757_vm15, %v1755_v35, %v1759_v12 }
 0x660   :  { %v1888_v17 = vadd.f32 %v1887_v56, %v1878_v23  ;;  %v3059_v30 = vadd.f32 %v1761_v45, %v2766_v4 }
 0x662   :  { %vm1890_vm2 = vcmp.gt.f32.partialorder %v1888_v17, 0.0  ;;  %v1892_v14 = vmul.f32 0.2, %v1888_v17  ;;  %1633 = vmax.xlane.f32.xlu0 %v1632_v47  ;;  %v1765_v28 = vsel %vm319_vm6, %v3059_v30, -inf }
 0x664   :  { %v2015_v53 = vpop.permute.xlu1 %2014  ;;  %v1894_v24 = vsel %vm1890_vm2, %v1888_v17, %v1892_v14 }
 0x665   :  { %v2022_v27 = vadd.f32 %v2020_v44, %v2015_v53  ;;  %v3064_v31 = vadd.f32 %v1894_v24, %v2766_v4 }
 0x666   :  { %1766 = vmax.xlane.f32.xlu0 %v1765_v28 }
 0x667   :  { %vm2024_vm4 = vcmp.gt.f32.partialorder %v2022_v27, 0.0  ;;  %v2026_v49 = vmul.f32 0.2, %v2022_v27  ;;  %v1898_v50 = vsel %vm319_vm6, %v3064_v31, -inf }
 0x669   :  { %v2028_v32 = vsel %vm2024_vm4, %v2022_v27, %v2026_v49 }
 0x66a   :  { %1899 = vmax.xlane.f32.xlu0 %v1898_v50  ;;  %v3072_v22 = vadd.f32 %v2028_v32, %v2741_v43 }
 0x66c   :  { %v2034_v38 = vsel %vm319_vm6, %v3072_v22, -inf }
 0x66d   :  { %2035 = vmax.xlane.f32.xlu1 %v2034_v38 }
 0x66e   :  { %2032 = vmax.xlane.f32.xlu0 %v2031_v41 }
 0x67e   :  { %1444 = vrot.lane.b32.xlu1 %v2972_v39, %s2590_s7 }
 0x682   :  { %1656 = vrot.lane.b32.xlu1 %v2972_v39, %s2585_s1 }
 0x684   :  { %1442 = vrot.lane.b32.xlu0 %v2976_v40, %s2590_s7 }
 0x686   :  { %1789 = vrot.lane.b32.xlu1 %v2972_v39, %s2591_s22 }
 0x688   :  { %1654 = vrot.lane.b32.xlu0 %v2976_v40, %s2585_s1 }
 0x68a   :  { %1922 = vrot.lane.b32.xlu1 %v2972_v39, %s2586_s0 }
 0x68c   :  { %1787 = vrot.lane.b32.xlu0 %v2976_v40, %s2591_s22 }
 0x690   :  { %1920 = vrot.lane.b32.xlu0 %v2976_v40, %s2586_s0 }
 0x6d4   :  { %v1425_v43 = vpop.xlane.xlu0 %1424  ;;  %v1381_v4 = vpop.xlane.xlu1 %1380 }
 0x6d5   :  { %v1427_v25 = vsub.f32 %v3013_v52, %v1425_v43  ;;  %v1383_v48 = vsub.f32 %v3016_v26, %v1381_v4 }
 0x6d7   :  { %v1386_v56 = vmul.f32 1.442695, %v1383_v48  ;;  %v1430_v36 = vmul.f32 1.442695, %v1427_v25 }
 0x6d8   :  { %v1637_v46 = vpop.xlane.xlu1 %1636 }
 0x6d9   :  { %2528 = vpow2.f32 %v1386_v56  ;;  %v1639_v59 = vsub.f32 %v3026_v60, %v1637_v46 }
 0x6da   :  { %2530 = vpow2.f32 %v1430_v36 }
 0x6db   :  { %v1642_v51 = vmul.f32 1.442695, %v1639_v59 }
 0x6dc   :  { %v1770_v62 = vpop.xlane.xlu1 %1769 }
 0x6dd   :  { %v1772_v57 = vsub.f32 %v3031_v5, %v1770_v62  ;;  %2532 = vpow2.f32 %v1642_v51 }
 0x6df   :  { %v1775_v1 = vmul.f32 1.442695, %v1772_v57 }
 0x6e0   :  { %v1903_v63 = vpop.xlane.xlu1 %1902 }
 0x6e1   :  { %v1905_v6 = vsub.f32 %v3036_v0, %v1903_v63  ;;  %2534 = vpow2.f32 %v1775_v1 }
 0x6e3   :  { %v1908_v52 = vmul.f32 1.442695, %v1905_v6 }
 0x6e4   :  { %v1422_v8 = vpop.xlane.xlu1 %1421 }
 0x6e5   :  { %v1426_v26 = vsub.f32 %v3041_v19, %v1422_v8  ;;  %2536 = vpow2.f32 %v1908_v52 }
 0x6e6   :  { %v3096_v11 = vpop.eup %2528 }
 0x6e7   :  { %v1378_v2 = vpop.xlane.xlu0 %1377  ;;  %v1391_v15 = vsel %vm319_vm6, %v3096_v11, 0.0  ;;  %v3101_v5 = vpop.eup %2530  ;;  %v1428_v55 = vmul.f32 1.442695, %v1426_v26 }
 0x6e8   :  { %v1382_v60 = vsub.f32 %v3046_v37, %v1378_v2  ;;  %1392 = vadd.xlane.f32.xlu1 %v1391_v15  ;;  %v1435_v18 = vsel %vm319_vm6, %v3101_v5, 0.0 }
 0x6ea   :  { %v1384_v20 = vmul.f32 1.442695, %v1382_v60  ;;  %v3106_v29 = vpop.eup %2532 }
 0x6eb   :  { %v1634_v0 = vpop.xlane.xlu0 %1633  ;;  %v1647_v7 = vsel %vm319_vm6, %v3106_v29, 0.0 }
 0x6ec   :  { %2538 = vpow2.f32 %v1384_v20  ;;  %v1638_v21 = vsub.f32 %v3054_v9, %v1634_v0  ;;  %1436 = vadd.xlane.f32.xlu1 %v1435_v18 }
 0x6ed   :  { %2540 = vpow2.f32 %v1428_v55 }
 0x6ee   :  { %v1640_v19 = vmul.f32 1.442695, %v1638_v21  ;;  %v3111_v61 = vpop.eup %2534 }
 0x6ef   :  { %v1767_v10 = vpop.xlane.xlu0 %1766  ;;  %v1780_v37 = vsel %vm319_vm6, %v3111_v61, 0.0 }
 0x6f0   :  { %v1771_v58 = vsub.f32 %v3059_v30, %v1767_v10  ;;  %1648 = vadd.xlane.f32.xlu1 %v1647_v7  ;;  %2542 = vpow2.f32 %v1640_v19 }
 0x6f2   :  { %v1773_v33 = vmul.f32 1.442695, %v1771_v58  ;;  %v3116_v44 = vpop.eup %2536 }
 0x6f3   :  { %v1900_v35 = vpop.xlane.xlu0 %1899  ;;  %v1913_v45 = vsel %vm319_vm6, %v3116_v44, 0.0 }
 0x6f4   :  { %v1904_v34 = vsub.f32 %v3064_v31, %v1900_v35  ;;  %1781 = vadd.xlane.f32.xlu1 %v1780_v37  ;;  %2544 = vpow2.f32 %v1773_v33 }
 0x6f6   :  { %v1906_v12 = vmul.f32 1.442695, %v1904_v34  ;;  %v2036_v42 = vpop.xlane.xlu1 %2035 }
 0x6f7   :  { %v2038_v9 = vsub.f32 %v3072_v22, %v2036_v42  ;;  %v2033_v16 = vpop.xlane.xlu0 %2032 }
 0x6f8   :  { %v2037_v23 = vsub.f32 %v3069_v3, %v2033_v16  ;;  %1914 = vadd.xlane.f32.xlu1 %v1913_v45  ;;  %2546 = vpow2.f32 %v1906_v12 }
 0x6f9   :  { %v3122_v17 = vpop.eup %2538  ;;  %v2041_v47 = vmul.f32 1.442695, %v2038_v9 }
 0x6fa   :  { %v2039_v30 = vmul.f32 1.442695, %v2037_v23  ;;  %v1445_v13 = vpop.permute.xlu1 %1444  ;;  %v1388_v14 = vsel %vm319_vm6, %v3122_v17, 0.0  ;;  %v3126_v53 = vpop.eup %2540 }
 0x6fb   :  { %2548 = vpow2.f32 %v2041_v47  ;;  %1389 = vadd.xlane.f32.xlu0 %v1388_v14  ;;  %v1443_v24 = vpop.permute.xlu0 %1442  ;;  %2393 = vmatprep.subr.mxu1 %v1445_v13  ;;  %v1432_v28 = vsel %vm319_vm6, %v3126_v53, 0.0 }
 0x6fc   :  { %2394 = vmatpush3.msra.mxu1 %v1445_v13  ;;  %2550 = vpow2.f32 %v2039_v30 }
 0x6fd   :  { %2395 = vmatprep.subr.mxu1 %v1443_v24  ;;  %v3132_v31 = vpop.eup %2542 }
 0x6fe   :  { %2396 = vmatpush3.msra.mxu1 %v1443_v24  ;;  %v3128_v27 = vpop.permute.xlu1 %1656  ;;  %v1644_v49 = vsel %vm319_vm6, %v3132_v31, 0.0 }
 0x6ff   :  { %1433 = vadd.xlane.f32.xlu0 %v1432_v28  ;;  %2407 = vmatprep.subr.mxu1 %v3128_v27  ;;  %v1655_v48 = vpop.permute.xlu0 %1654 }
 0x701   :  { %v3137_v50 = vpop.eup %2544 }
 0x702   :  { %v1790_v54 = vpop.permute.xlu1 %1789  ;;  %v1777_v32 = vsel %vm319_vm6, %v3137_v50, 0.0 }
 0x703   :  { %1645 = vadd.xlane.f32.xlu0 %v1644_v49  ;;  %2414 = vmatprep.subr.mxu0 %v1790_v54  ;;  %v1788_v36 = vpop.permute.xlu0 %1787 }
 0x705   :  { %v3141_v3 = vpop.eup %2546 }
 0x706   :  { %v1910_v41 = vsel %vm319_vm6, %v3141_v3, 0.0  ;;  %v1923_v25 = vpop.permute.xlu1 %1922 }
 0x707   :  { %1778 = vadd.xlane.f32.xlu0 %v1777_v32  ;;  %v1921_v59 = vpop.permute.xlu0 %1920 }
 0x708   :  { %v3143_v22 = vpop.eup %2548 }
 0x709   :  { %v2046_v38 = vsel %vm319_vm6, %v3143_v22, 0.0  ;;  %v3149_v43 = vpop.eup %2550 }
 0x70a   :  { %2047 = vadd.xlane.f32.xlu1 %v2046_v38  ;;  %v2043_v4 = vsel %vm319_vm6, %v3149_v43, 0.0 }
 0x70b   :  { %1911 = vadd.xlane.f32.xlu0 %v1910_v41 }
 0x70f   :  { %2044 = vadd.xlane.f32.xlu0 %v2043_v4 }
 0x71b   :  { %2055 = vrot.lane.b32.xlu1 %v2972_v39, %s2592_s2 }
 0x725   :  { %2053 = vrot.lane.b32.xlu0 %v2976_v40, %s2592_s2 }
 0x771   :  { %v1393_v56 = vpop.xlane.xlu1 %1392 }
 0x772   :  { %2552 = vrcp.f32 %v1393_v56 }
 0x775   :  { %v1437_v46 = vpop.xlane.xlu1 %1436 }
 0x779   :  { %v1649_v51 = vpop.xlane.xlu1 %1648 }
 0x77d   :  { %v1782_v1 = vpop.xlane.xlu1 %1781 }
 0x77f   :  { %v2553_v6 = vpop.eup %2552 }
 0x780   :  { %v1397_v60 = vmul.f32 %v2553_v6, %v3096_v11 }
 0x781   :  { %v1915_v39 = vpop.xlane.xlu1 %1914 }
 0x784   :  { %v1390_v62 = vpop.xlane.xlu0 %1389 }
 0x785   :  { %2554 = vrcp.f32 %v1390_v62 }
 0x786   :  { %2556 = vrcp.f32 %v1437_v46 }
 0x788   :  { %v1434_v57 = vpop.xlane.xlu0 %1433 }
 0x789   :  { %2558 = vrcp.f32 %v1434_v57 }
 0x78a   :  { %2560 = vrcp.f32 %v1649_v51 }
 0x78c   :  { %v1646_v63 = vpop.xlane.xlu0 %1645 }
 0x78d   :  { %2562 = vrcp.f32 %v1646_v63 }
 0x78e   :  { %2564 = vrcp.f32 %v1782_v1 }
 0x790   :  { %v1779_v40 = vpop.xlane.xlu0 %1778 }
 0x791   :  { %2566 = vrcp.f32 %v1779_v40 }
 0x792   :  { %v2555_v52 = vpop.eup %2554  ;;  %2568 = vrcp.f32 %v1915_v39 }
 0x793   :  { %v2048_v8 = vpop.xlane.xlu1 %2047  ;;  %v1396_v26 = vmul.f32 %v2555_v52, %v3122_v17  ;;  %v2557_v15 = vpop.eup %2556 }
 0x794   :  { %v1912_v2 = vpop.xlane.xlu0 %1911  ;;  %v1441_v18 = vmul.f32 %v2557_v15, %v3101_v5 }
 0x795   :  { %2570 = vrcp.f32 %v1912_v2  ;;  %2404 = vmatprep.mubr.msk.f32.mxu0 %vm319_vm6, %v1396_v26 }
 0x796   :  { %v2559_v55 = vpop.eup %2558  ;;  %2405 = vmatmul.mubr.msk.f32.vlgmr.msra.gmra.mxu0 %vm319_vm6, %v1397_v60  ;;  %2572 = vrcp.f32 %v2048_v8 }
 0x797   :  { %2415 = vmatpush3.msra.mxu0 %v1790_v54  ;;  %v2056_v20 = vpop.permute.xlu1 %2055  ;;  %v1440_v0 = vmul.f32 %v2559_v55, %v3126_v53  ;;  %v2561_v19 = vpop.eup %2560 }
 0x798   :  { %2416 = vmatprep.subr.mxu0 %v1788_v36  ;;  %v2045_v21 = vpop.xlane.xlu0 %2044  ;;  %v1653_v58 = vmul.f32 %v2561_v19, %v3106_v29 }
 0x799   :  { %2574 = vrcp.f32 %v2045_v21  ;;  %2417 = vmatpush3.msra.mxu0 %v1788_v36  ;;  %2397 = vmatprep.mubr.msk.f32.mxu1 %vm319_vm6, %v1440_v0 }
 0x79a   :  { %v2563_v11 = vpop.eup %2562  ;;  %2428 = vmatprep.subr.mxu0 %v2056_v20  ;;  %2398 = vmatmul.mubr.msk.f32.vlgmr.msra.gmra.mxu1 %vm319_vm6, %v1441_v18 }
 0x79b   :  { %2408 = vmatpush3.msra.mxu1 %v3128_v27  ;;  %v1652_v10 = vmul.f32 %v2563_v11, %v3132_v31  ;;  %v2565_v7 = vpop.eup %2564 }
 0x79c   :  { %2409 = vmatprep.subr.mxu1 %v1655_v48  ;;  %v1786_v35 = vmul.f32 %v2565_v7, %v3111_v61  ;;  %v2054_v29 = vpop.permute.xlu0 %2053 }
 0x79d   :  { %2410 = vmatpush3.msra.mxu1 %v1655_v48  ;;  %2411 = vmatprep.mubr.msk.f32.mxu1 %vm319_vm6, %v1652_v10 }
 0x79e   :  { %v2567_v5 = vpop.eup %2566  ;;  %2421 = vmatprep.subr.mxu1 %v1923_v25  ;;  %2412 = vmatmul.mubr.msk.f32.vlgmr.msra.gmra.mxu1 %vm319_vm6, %v1653_v58 }
 0x79f   :  { %2422 = vmatpush3.msra.mxu1 %v1923_v25  ;;  %v1785_v33 = vmul.f32 %v2567_v5, %v3137_v50  ;;  %v2569_v34 = vpop.eup %2568 }
 0x7a0   :  { %2423 = vmatprep.subr.mxu1 %v1921_v59  ;;  %v1919_v42 = vmul.f32 %v2569_v34, %v3116_v44 }
 0x7a1   :  { %2424 = vmatpush3.msra.mxu1 %v1921_v59  ;;  %2418 = vmatprep.mubr.msk.f32.mxu0 %vm319_vm6, %v1785_v33 }
 0x7a2   :  { %v2571_v37 = vpop.eup %2570  ;;  %2419 = vmatmul.mubr.msk.f32.vlgmr.msra.gmra.mxu0 %vm319_vm6, %v1786_v35 }
 0x7a3   :  { %2429 = vmatpush3.msra.mxu0 %v2056_v20  ;;  %v1918_v12 = vmul.f32 %v2571_v37, %v3141_v3  ;;  %v2573_v9 = vpop.eup %2572 }
 0x7a4   :  { %2430 = vmatprep.subr.mxu0 %v2054_v29  ;;  %v2052_v23 = vmul.f32 %v2573_v9, %v3143_v22 }
 0x7a5   :  { %2431 = vmatpush3.msra.mxu0 %v2054_v29  ;;  %2425 = vmatprep.mubr.msk.f32.mxu1 %vm319_vm6, %v1918_v12 }
 0x7a6   :  { %v2575_v16 = vpop.eup %2574  ;;  %2426 = vmatmul.mubr.msk.f32.vlgmr.msra.gmra.mxu1 %vm319_vm6, %v1919_v42 }
 0x7a7   :  { %v2051_v61 = vmul.f32 %v2575_v16, %v3149_v43  ;;  %v2199_v43 = vld [vmem:[%s3200_s9] ss:$0 sm:$0xff] }
 0x7a9   :  { %2432 = vmatprep.mubr.msk.f32.mxu0 %vm319_vm6, %v2051_v61 }
 0x7aa   :  { %2433 = vmatmul.mubr.msk.f32.vlgmr.msra.gmra.mxu0 %vm319_vm6, %v2052_v23 }
 0x856   :  { %v2406_v17 = vpop.f32.mrf.mxu0 }
 0x858   :  { %v1601_v30 = vpop.f32.mrf.mxu0 }
 0x85a   :  { %v2399_v45 = vpop.f32.mrf.mxu1 }
 0x85b   :  { %v1607_v14 = vadd.f32 %v2406_v17, %v2399_v45 }
 0x85c   :  { %v1520_v47 = vpop.f32.mrf.mxu1 }
 0x85d   :  { %v1602_v24 = vadd.f32 %v1601_v30, %v1520_v47 }
 0x85e   :  { %v2413_v44 = vpop.f32.mrf.mxu1 }
 0x85f   :  { %v1742_v27 = vadd.f32 %v2413_v44, %v1607_v14 }
 0x860   :  { %v1732_v53 = vpop.f32.mrf.mxu1 }
 0x861   :  { %v1741_v54 = vadd.f32 %v1732_v53, %v1602_v24 }
 0x862   :  { %v2420_v13 = vpop.f32.mrf.mxu0 }
 0x863   :  { %v1875_v49 = vadd.f32 %v2420_v13, %v1742_v27 }
 0x864   :  { %v1865_v28 = vpop.f32.mrf.mxu0 }
 0x865   :  { %v1874_v32 = vadd.f32 %v1865_v28, %v1741_v54 }
 0x866   :  { %v2427_v31 = vpop.f32.mrf.mxu1 }
 0x867   :  { %v2008_v3 = vadd.f32 %v2427_v31, %v1875_v49 }
 0x868   :  { %v1998_v50 = vpop.f32.mrf.mxu1 }
 0x869   :  { %v2007_v38 = vadd.f32 %v1998_v50, %v1874_v32 }
 0x86a   :  { %v2434_v22 = vpop.f32.mrf.mxu0 }
 0x86b   :  { %v2141_v41 = vadd.f32 %v2434_v22, %v2008_v3 }
 0x86c   :  { %v2131_v4 = vpop.f32.mrf.mxu0 }
 0x86d   :  { %v2143_v25 = vmul.f32 0.16666667, %v2141_v41  ;;  %v2140_v48 = vadd.f32 %v2131_v4, %v2007_v38 }
 0x86f   :  { %v2151_v56 = vadd.f32 %v2199_v43, %v2143_v25  ;;  %v2142_v36 = vmul.f32 0.16666667, %v2140_v48 }
 0x871   :  { %2153 = vst.msk [vmem:[%s3201_s10 + $0x8] sm:$0xff] %vm58_vm0, %v2151_v56  ;;  %v2150_v46 = vadd.f32 %v2199_v43, %v2142_v36 }
 0x873   :  { %2152 = vst.msk [vmem:[%s3201_s10] sm:$0xff] %vm58_vm0, %v2150_v46 }

</bundles_post_ra>
